<compile_context>
chip_gen: v6e
topology: v6e:2x2x1
jax: 0.10.0
libtpu: 0.0.40
codegen_flags: <defaults>
</compile_context>

<pallas_src>
import itertools

import jax
import jax.numpy as jnp
import numpy as np
from jax.experimental import pallas as pl
from jax.experimental.pallas import tpu as pltpu

NEG_SLOPE = 0.01  # nn.LeakyReLU default negative_slope


def _vmem_budgets():
    """Generation-aware VMEM tile budget and scoped-VMEM limit."""
    try:
        cap = int(pltpu.get_tpu_info().vmem_capacity_bytes)
    except Exception:  # CPU interpret / old runtime: assume the smallest (v7x) part
        cap = 64 * 1024 * 1024
    tile_budget = min(cap // 4, 32 * 1024 * 1024)       # 16 MiB on v7x, 32 MiB on v5e/v6e
    vmem_limit = min((cap * 3) // 4, 96 * 1024 * 1024)   # 48 MiB on v7x, 96 MiB on v5e/v6e
    return tile_budget, vmem_limit


def _pick_flat_tile(sq, n_batch, halo, in_row_bytes, out_row_bytes, budget):
    """Pick the lane tile TM (multiple of the halo width, hence of 128) for the flattened
    pooled axis.  Prefers >= 4 total grid steps (>= 2 per v7x TensorCore), then minimal HBM
    read (tile + halo re-read), then the largest tile; always bounded by the VMEM budget."""
    cands = []
    tm_max = max(halo, -(-sq // 128) * 128)
    tm = halo
    while tm <= tm_max:
        nt = -(-sq // tm)
        vmem = (2 * in_row_bytes * (tm + halo)    # double-buffered input tile + halo block
                + 2 * out_row_bytes * tm          # double-buffered output tile
                + in_row_bytes * (tm + halo))     # halo-assembly scratch
        if vmem <= budget:
            cands.append(((0 if n_batch * nt >= 4 else 1, nt * (tm + halo), -tm), tm, nt))
        tm += halo
    if not cands:
        return halo, -(-sq // halo)
    _, tm, nt = min(cands)
    return tm, nt


def conv_layer_forward(x_ncdhw, weight_oidhw, gamma, beta, running_mean, running_var,
                       kernel=(3, 1, 1), pooling=(2, 2, 0), eps=1e-5,
                       compute_dtype=jnp.bfloat16):
    k, stride, pad = kernel
    pk, ps, pp = pooling
    assert k == 3 and stride == 1, "implicit-im2col path covers the 3x3x3, stride-1 conv"
    assert pk == 2 and ps == 2 and pp == 0, "non-overlapping, unpadded 2x2x2 pooling"

    N, Cin, D, H, W = x_ncdhw.shape
    Cout = weight_oidhw.shape[0]
    Dpad, Hpad, Wpad = D + 2 * pad, H + 2 * pad, W + 2 * pad
    Do, Ho, Wo = Dpad - k + 1, Hpad - k + 1, Wpad - k + 1
    assert Dpad % 2 == 0 and Hpad % 2 == 0 and Wpad % 2 == 0, "padded extents must be even"
    assert Do % 2 == 0 and Ho % 2 == 0 and Wo % 2 == 0, "conv output must tile by the pool"
    Dp, Hp, Wp = Do // 2, Ho // 2, Wo // 2            # pooled output extents
    Dq, Hq, Wq = Dpad // 2, Hpad // 2, Wpad // 2      # pooled-parity grid extents

    PV = 8      # pooling-window volume (2*2*2)  -> row groups of the GEMM output
    NPAR = 8    # input parity classes (2*2*2)   -> contraction row groups
    NS = 8      # flat shifts ({0,1} per pooled dim)
    RPC = NPAR * Cin                                   # contraction depth
    Sq = Dq * Hq * Wq                                  # pooled-parity flat length / sample

    # flat-shift offsets along the (Dq, Hq, Wq)-flattened lane axis
    offs = [sd * Hq * Wq + sh * Wq + sw
            for sd in (0, 1) for sh in (0, 1) for sw in (0, 1)]
    HALO = max(128, -(-max(offs) // 128) * 128)        # halo lanes, multiple of 128

    bpe = jnp.dtype(compute_dtype).itemsize
    out_dtype = compute_dtype                          # bf16 output in the perf config
    tile_budget, vmem_limit = _vmem_budgets()
    TM, n_tiles = _pick_flat_tile(Sq, N, HALO, RPC * bpe,
                                  Cout * jnp.dtype(out_dtype).itemsize, tile_budget)
    TMB = TM // HALO
    S_out = n_tiles * TM
    Spad = S_out + HALO

    # ---- wrapper glue (XLA, ~1x input traffic): pad + pool-parity space-to-depth ----------
    xpad = jnp.pad(x_ncdhw, ((0, 0), (0, 0), (pad, pad), (pad, pad), (pad, pad)))
    xpar = xpad.reshape(N, Cin, Dq, 2, Hq, 2, Wq, 2)
    xpar = jnp.transpose(xpar, (0, 3, 5, 7, 1, 2, 4, 6))   # (N, rd, rh, rw, Cin, Dq, Hq, Wq)
    xpar = xpar.reshape(N, RPC, Sq)
    xpar = jnp.pad(xpar, ((0, 0), (0, 0), (0, Spad - Sq))).astype(compute_dtype)

    # ---- fold conv weights per (flat shift, pool position, parity) ------------------------
    sel = np.zeros((NS, PV, NPAR, k, k, k), np.float32)
    for ai, (a, b, c) in enumerate(itertools.product((0, 1), (0, 1), (0, 1))):
        for dz, dy, dx in itertools.product(range(k), range(k), range(k)):
            sd, rd = divmod(a + dz, 2)
            sh, rh = divmod(b + dy, 2)
            sw, rw = divmod(c + dx, 2)
            sel[sd * 4 + sh * 2 + sw, ai, rd * 4 + rh * 2 + rw, dz, dy, dx] = 1.0
    wfold = jnp.einsum('sarijk,ocijk->saorc', jnp.asarray(sel),
                       weight_oidhw.astype(jnp.float32))
    wfold = wfold.reshape(NS, PV * Cout, RPC).astype(compute_dtype)

    # BatchNorm3d (eval) folded to per-channel scale/shift, kept in f32.
    inv_std = 1.0 / jnp.sqrt(running_var.astype(jnp.float32) + eps)
    g32 = gamma.astype(jnp.float32)
    scale = (g32 * inv_std).reshape(Cout, 1)
    shift = (beta.astype(jnp.float32)
             - running_mean.astype(jnp.float32) * g32 * inv_std).reshape(Cout, 1)

    # ---- fused Pallas kernel ---------------------------------------------------------------
    def kernel(xa_ref, xb_ref, w_ref, scale_ref, shift_ref, o_ref, halo_ref):
        # assemble [TM + HALO] contiguous lanes so every shifted view is a static VMEM slice
        halo_ref[:, :TM] = xa_ref[0]
        halo_ref[:, TM:] = xb_ref[0]
        acc = jnp.zeros((PV * Cout, TM), jnp.float32)
        for s in range(NS):                      # implicit im2col: one dot per pooled shift
            xs = halo_ref[:, offs[s]:offs[s] + TM]
            acc = acc + jnp.dot(w_ref[s], xs, preferred_element_type=jnp.float32)
        pooled = acc[0:Cout]                     # MaxPool3d over the PV pool-position groups
        for a in range(1, PV):
            pooled = jnp.maximum(pooled, acc[a * Cout:(a + 1) * Cout])
        y = pooled * scale_ref[...] + shift_ref[...]          # BatchNorm3d (eval)
        o_ref[0] = jnp.where(y >= 0.0, y, NEG_SLOPE * y).astype(o_ref.dtype)  # LeakyReLU
        # TODO(synk): nn.Dropout is identity in eval mode; train-mode masking / BN batch
        # statistics are not implemented.

    out_flat = pl.pallas_call(
        kernel,
        out_shape=jax.ShapeDtypeStruct((N, Cout, S_out), out_dtype),
        grid=(N, n_tiles),
        in_specs=[
            pl.BlockSpec((1, RPC, TM), lambda n, i: (n, 0, i)),                 # input tile
            pl.BlockSpec((1, RPC, HALO), lambda n, i: (n, 0, (i + 1) * TMB)),   # halo block
            pl.BlockSpec((NS, PV * Cout, RPC), lambda n, i: (0, 0, 0)),         # weights
            pl.BlockSpec((Cout, 1), lambda n, i: (0, 0)),                       # BN scale
            pl.BlockSpec((Cout, 1), lambda n, i: (0, 0)),                       # BN shift
        ],
        out_specs=pl.BlockSpec((1, Cout, TM), lambda n, i: (n, 0, i)),
        scratch_shapes=[pltpu.VMEM((RPC, TM + HALO), compute_dtype)],
        compiler_params=pltpu.CompilerParams(
            dimension_semantics=("parallel", "parallel"),
            vmem_limit_bytes=vmem_limit),
    )(xpar, xpar, wfold, scale, shift)

    # N-major output: only a valid-region slice remains (no NCDHW transpose)
    out = out_flat[:, :, :Sq].reshape(N, Cout, Dq, Hq, Wq)[:, :, :Dp, :Hp, :Wp]
    return out


def reference_forward(x, w, gamma, beta, rmean, rvar, eps=1e-5):
    conv = jax.lax.conv_general_dilated(
        x, w, window_strides=(1, 1, 1), padding=((1, 1), (1, 1), (1, 1)),
        dimension_numbers=("NCDHW", "OIDHW", "NCDHW"))
    pooled = jax.lax.reduce_window(conv, -jnp.inf, jax.lax.max,
                                   window_dimensions=(1, 1, 2, 2, 2),
                                   window_strides=(1, 1, 2, 2, 2), padding="VALID")
    scale = (gamma / jnp.sqrt(rvar + eps))[None, :, None, None, None]
    shift = (beta - rmean * gamma / jnp.sqrt(rvar + eps))[None, :, None, None, None]
    bn = pooled * scale + shift
    return jnp.where(bn >= 0, bn, NEG_SLOPE * bn)


if __name__ == "__main__":
    key = jax.random.PRNGKey(0)
    k_x, k_w, k_g, k_b, k_m, k_v = jax.random.split(key, 6)

    # ConvLayer(in_channels=4, out_channels=8, drop_rate=0.1, kernel=(3,1,1), pooling=(2,2,0))
    N, Cin, Cout, D, H, W = 2, 4, 8, 16, 16, 16
    x = jax.random.normal(k_x, (N, Cin, D, H, W), dtype=jnp.float32)
    weight = 0.1 * jax.random.normal(k_w, (Cout, Cin, 3, 3, 3), dtype=jnp.float32)
    gamma = 1.0 + 0.1 * jax.random.normal(k_g, (Cout,), dtype=jnp.float32)
    beta = 0.1 * jax.random.normal(k_b, (Cout,), dtype=jnp.float32)
    running_mean = 0.1 * jax.random.normal(k_m, (Cout,), dtype=jnp.float32)
    running_var = 0.5 + jnp.abs(jax.random.normal(k_v, (Cout,), dtype=jnp.float32))

    ref = reference_forward(x, weight, gamma, beta, running_mean, running_var)

    fwd_f32 = jax.jit(lambda *a: conv_layer_forward(*a, compute_dtype=jnp.float32))
    fwd_bf16 = jax.jit(lambda *a: conv_layer_forward(*a, compute_dtype=jnp.bfloat16))

    # f32 MXU operands: tight numerical check against the XLA reference.
    out_f32 = jax.block_until_ready(
        fwd_f32(x, weight, gamma, beta, running_mean, running_var))
    np.testing.assert_allclose(np.asarray(out_f32), np.asarray(ref), rtol=1e-4, atol=1e-4)

    # bf16 MXU operands + bf16 output (perf config; f32 accumulation + f32 epilogue).
    out_bf16 = jax.block_until_ready(
        fwd_bf16(x, weight, gamma, beta, running_mean, running_var))
    np.testing.assert_allclose(np.asarray(out_bf16.astype(jnp.float32)), np.asarray(ref),
                               rtol=5e-2, atol=5e-2)

    assert out_f32.shape == (N, Cout, D // 2, H // 2, W // 2)
    print("KERNEL_OK")
</pallas_src>

<mosaic_0001>
module attributes {stable_mosaic.version = 11 : i64} {
  func.func @kernel(%arg0: i32, %arg1: i32, %arg2: memref<1x32x384xf32, #tpu.memory_space<vmem>>, %arg3: memref<1x32x128xf32, #tpu.memory_space<vmem>>, %arg4: memref<8x64x32xf32, #tpu.memory_space<vmem>>, %arg5: memref<8x1xf32, #tpu.memory_space<vmem>>, %arg6: memref<8x1xf32, #tpu.memory_space<vmem>>, %arg7: memref<1x8x384xf32, #tpu.memory_space<vmem>>, %arg8: memref<32x512xf32, #tpu.memory_space<vmem>>) attributes {dimension_semantics = [#tpu.dimension_semantics<parallel>, #tpu.dimension_semantics<parallel>], iteration_bounds = array<i64: 2, 2>, scalar_prefetch = 0 : i64, scratch_operands = 1 : i64, tpu.core_type = #tpu.core_type<tc>, window_params = [{transform_indices = @transform_0, window_bounds = array<i64: 1, 32, 384>}, {transform_indices = @transform_1, window_bounds = array<i64: 1, 32, 128>}, {pipeline_mode = #tpu.pipeline_mode<synchronous>, transform_indices = @transform_2, window_bounds = array<i64: 8, 64, 32>}, {pipeline_mode = #tpu.pipeline_mode<synchronous>, transform_indices = @transform_3, window_bounds = array<i64: 8, 1>}, {pipeline_mode = #tpu.pipeline_mode<synchronous>, transform_indices = @transform_4, window_bounds = array<i64: 8, 1>}, {transform_indices = @transform_5, window_bounds = array<i64: 1, 8, 384>}]} {
    %c0 = arith.constant 0 : index
    %c0_0 = arith.constant 0 : index
    %c0_1 = arith.constant 0 : index
    %0 = vector.load %arg2[%c0, %c0_0, %c0_1] : memref<1x32x384xf32, #tpu.memory_space<vmem>>, vector<1x32x384xf32>
    %1 = vector.shape_cast %0 : vector<1x32x384xf32> to vector<32x384xf32>
    %c0_2 = arith.constant 0 : index
    %c0_3 = arith.constant 0 : index
    %2 = vector.load %arg8[%c0_2, %c0_3] : memref<32x512xf32, #tpu.memory_space<vmem>>, vector<32x384xf32>
    tpu.vector_store %arg8[%c0_2, %c0_3], %1 {strides = array<i32>} : memref<32x512xf32, #tpu.memory_space<vmem>>, vector<32x384xf32>,
    %c0_4 = arith.constant 0 : index
    %c0_5 = arith.constant 0 : index
    %c0_6 = arith.constant 0 : index
    %3 = vector.load %arg3[%c0_4, %c0_5, %c0_6] : memref<1x32x128xf32, #tpu.memory_space<vmem>>, vector<1x32x128xf32>
    %4 = vector.shape_cast %3 : vector<1x32x128xf32> to vector<32x128xf32>
    %c0_7 = arith.constant 0 : index
    %c384 = arith.constant 384 : index
    %5 = vector.load %arg8[%c0_7, %c384] : memref<32x512xf32, #tpu.memory_space<vmem>>, vector<32x128xf32>
    tpu.vector_store %arg8[%c0_7, %c384], %4 {strides = array<i32>} : memref<32x512xf32, #tpu.memory_space<vmem>>, vector<32x128xf32>,
    %cst = arith.constant 0.000000e+00 : f32
    %6 = vector.broadcast %cst : f32 to vector<64x384xf32>
    %c0_8 = arith.constant 0 : index
    %c0_9 = arith.constant 0 : index
    %7 = vector.load %arg8[%c0_8, %c0_9] : memref<32x512xf32, #tpu.memory_space<vmem>>, vector<32x384xf32>
    %c0_10 = arith.constant 0 : index
    %c0_11 = arith.constant 0 : index
    %c0_12 = arith.constant 0 : index
    %8 = vector.load %arg4[%c0_10, %c0_11, %c0_12] : memref<8x64x32xf32, #tpu.memory_space<vmem>>, vector<1x64x32xf32>
    %9 = vector.shape_cast %8 : vector<1x64x32xf32> to vector<64x32xf32>
    %cst_13 = arith.constant dense<0.000000e+00> : vector<64x384xf32>
    %10 = tpu.matmul %9, %7, %cst_13 {dimension_numbers = #tpu.dot_dimension_numbers<[1], [0], [0], [1], [0, 0, 1, 1], [], []>} : vector<64x32xf32>, vector<32x384xf32>, vector<64x384xf32> -> vector<64x384xf32>
    %11 = arith.addf %6, %10 : vector<64x384xf32>
    %c0_14 = arith.constant 0 : index
    %c1 = arith.constant 1 : index
    %12 = vector.load %arg8[%c0_14, %c1] : memref<32x512xf32, #tpu.memory_space<vmem>>, vector<32x384xf32>
    %c1_15 = arith.constant 1 : index
    %c0_16 = arith.constant 0 : index
    %c0_17 = arith.constant 0 : index
    %13 = vector.load %arg4[%c1_15, %c0_16, %c0_17] : memref<8x64x32xf32, #tpu.memory_space<vmem>>, vector<1x64x32xf32>
    %14 = vector.shape_cast %13 : vector<1x64x32xf32> to vector<64x32xf32>
    %cst_18 = arith.constant dense<0.000000e+00> : vector<64x384xf32>
    %15 = tpu.matmul %14, %12, %cst_18 {dimension_numbers = #tpu.dot_dimension_numbers<[1], [0], [0], [1], [0, 0, 1, 1], [], []>} : vector<64x32xf32>, vector<32x384xf32>, vector<64x384xf32> -> vector<64x384xf32>
    %16 = arith.addf %11, %15 : vector<64x384xf32>
    %c0_19 = arith.constant 0 : index
    %c9 = arith.constant 9 : index
    %17 = vector.load %arg8[%c0_19, %c9] : memref<32x512xf32, #tpu.memory_space<vmem>>, vector<32x384xf32>
    %c2 = arith.constant 2 : index
    %c0_20 = arith.constant 0 : index
    %c0_21 = arith.constant 0 : index
    %18 = vector.load %arg4[%c2, %c0_20, %c0_21] : memref<8x64x32xf32, #tpu.memory_space<vmem>>, vector<1x64x32xf32>
    %19 = vector.shape_cast %18 : vector<1x64x32xf32> to vector<64x32xf32>
    %cst_22 = arith.constant dense<0.000000e+00> : vector<64x384xf32>
    %20 = tpu.matmul %19, %17, %cst_22 {dimension_numbers = #tpu.dot_dimension_numbers<[1], [0], [0], [1], [0, 0, 1, 1], [], []>} : vector<64x32xf32>, vector<32x384xf32>, vector<64x384xf32> -> vector<64x384xf32>
    %21 = arith.addf %16, %20 : vector<64x384xf32>
    %c0_23 = arith.constant 0 : index
    %c10 = arith.constant 10 : index
    %22 = vector.load %arg8[%c0_23, %c10] : memref<32x512xf32, #tpu.memory_space<vmem>>, vector<32x384xf32>
    %c3 = arith.constant 3 : index
    %c0_24 = arith.constant 0 : index
    %c0_25 = arith.constant 0 : index
    %23 = vector.load %arg4[%c3, %c0_24, %c0_25] : memref<8x64x32xf32, #tpu.memory_space<vmem>>, vector<1x64x32xf32>
    %24 = vector.shape_cast %23 : vector<1x64x32xf32> to vector<64x32xf32>
    %cst_26 = arith.constant dense<0.000000e+00> : vector<64x384xf32>
    %25 = tpu.matmul %24, %22, %cst_26 {dimension_numbers = #tpu.dot_dimension_numbers<[1], [0], [0], [1], [0, 0, 1, 1], [], []>} : vector<64x32xf32>, vector<32x384xf32>, vector<64x384xf32> -> vector<64x384xf32>
    %26 = arith.addf %21, %25 : vector<64x384xf32>
    %c0_27 = arith.constant 0 : index
    %c81 = arith.constant 81 : index
    %27 = vector.load %arg8[%c0_27, %c81] : memref<32x512xf32, #tpu.memory_space<vmem>>, vector<32x384xf32>
    %c4 = arith.constant 4 : index
    %c0_28 = arith.constant 0 : index
    %c0_29 = arith.constant 0 : index
    %28 = vector.load %arg4[%c4, %c0_28, %c0_29] : memref<8x64x32xf32, #tpu.memory_space<vmem>>, vector<1x64x32xf32>
    %29 = vector.shape_cast %28 : vector<1x64x32xf32> to vector<64x32xf32>
    %cst_30 = arith.constant dense<0.000000e+00> : vector<64x384xf32>
    %30 = tpu.matmul %29, %27, %cst_30 {dimension_numbers = #tpu.dot_dimension_numbers<[1], [0], [0], [1], [0, 0, 1, 1], [], []>} : vector<64x32xf32>, vector<32x384xf32>, vector<64x384xf32> -> vector<64x384xf32>
    %31 = arith.addf %26, %30 : vector<64x384xf32>
    %c0_31 = arith.constant 0 : index
    %c82 = arith.constant 82 : index
    %32 = vector.load %arg8[%c0_31, %c82] : memref<32x512xf32, #tpu.memory_space<vmem>>, vector<32x384xf32>
    %c5 = arith.constant 5 : index
    %c0_32 = arith.constant 0 : index
    %c0_33 = arith.constant 0 : index
    %33 = vector.load %arg4[%c5, %c0_32, %c0_33] : memref<8x64x32xf32, #tpu.memory_space<vmem>>, vector<1x64x32xf32>
    %34 = vector.shape_cast %33 : vector<1x64x32xf32> to vector<64x32xf32>
    %cst_34 = arith.constant dense<0.000000e+00> : vector<64x384xf32>
    %35 = tpu.matmul %34, %32, %cst_34 {dimension_numbers = #tpu.dot_dimension_numbers<[1], [0], [0], [1], [0, 0, 1, 1], [], []>} : vector<64x32xf32>, vector<32x384xf32>, vector<64x384xf32> -> vector<64x384xf32>
    %36 = arith.addf %31, %35 : vector<64x384xf32>
    %c0_35 = arith.constant 0 : index
    %c90 = arith.constant 90 : index
    %37 = vector.load %arg8[%c0_35, %c90] : memref<32x512xf32, #tpu.memory_space<vmem>>, vector<32x384xf32>
    %c6 = arith.constant 6 : index
    %c0_36 = arith.constant 0 : index
    %c0_37 = arith.constant 0 : index
    %38 = vector.load %arg4[%c6, %c0_36, %c0_37] : memref<8x64x32xf32, #tpu.memory_space<vmem>>, vector<1x64x32xf32>
    %39 = vector.shape_cast %38 : vector<1x64x32xf32> to vector<64x32xf32>
    %cst_38 = arith.constant dense<0.000000e+00> : vector<64x384xf32>
    %40 = tpu.matmul %39, %37, %cst_38 {dimension_numbers = #tpu.dot_dimension_numbers<[1], [0], [0], [1], [0, 0, 1, 1], [], []>} : vector<64x32xf32>, vector<32x384xf32>, vector<64x384xf32> -> vector<64x384xf32>
    %41 = arith.addf %36, %40 : vector<64x384xf32>
    %c0_39 = arith.constant 0 : index
    %c91 = arith.constant 91 : index
    %42 = vector.load %arg8[%c0_39, %c91] : memref<32x512xf32, #tpu.memory_space<vmem>>, vector<32x384xf32>
    %c7 = arith.constant 7 : index
    %c0_40 = arith.constant 0 : index
    %c0_41 = arith.constant 0 : index
    %43 = vector.load %arg4[%c7, %c0_40, %c0_41] : memref<8x64x32xf32, #tpu.memory_space<vmem>>, vector<1x64x32xf32>
    %44 = vector.shape_cast %43 : vector<1x64x32xf32> to vector<64x32xf32>
    %cst_42 = arith.constant dense<0.000000e+00> : vector<64x384xf32>
    %45 = tpu.matmul %44, %42, %cst_42 {dimension_numbers = #tpu.dot_dimension_numbers<[1], [0], [0], [1], [0, 0, 1, 1], [], []>} : vector<64x32xf32>, vector<32x384xf32>, vector<64x384xf32> -> vector<64x384xf32>
    %46 = arith.addf %41, %45 : vector<64x384xf32>
    %47 = vector.extract_strided_slice %46 {offsets = [0, 0], sizes = [8, 384], strides = [1, 1]} : vector<64x384xf32> to vector<8x384xf32>
    %48 = vector.extract_strided_slice %46 {offsets = [8, 0], sizes = [8, 384], strides = [1, 1]} : vector<64x384xf32> to vector<8x384xf32>
    %49 = arith.maximumf %47, %48 : vector<8x384xf32>
    %50 = vector.extract_strided_slice %46 {offsets = [16, 0], sizes = [8, 384], strides = [1, 1]} : vector<64x384xf32> to vector<8x384xf32>
    %51 = arith.maximumf %49, %50 : vector<8x384xf32>
    %52 = vector.extract_strided_slice %46 {offsets = [24, 0], sizes = [8, 384], strides = [1, 1]} : vector<64x384xf32> to vector<8x384xf32>
    %53 = arith.maximumf %51, %52 : vector<8x384xf32>
    %54 = vector.extract_strided_slice %46 {offsets = [32, 0], sizes = [8, 384], strides = [1, 1]} : vector<64x384xf32> to vector<8x384xf32>
    %55 = arith.maximumf %53, %54 : vector<8x384xf32>
    %56 = vector.extract_strided_slice %46 {offsets = [40, 0], sizes = [8, 384], strides = [1, 1]} : vector<64x384xf32> to vector<8x384xf32>
    %57 = arith.maximumf %55, %56 : vector<8x384xf32>
    %58 = vector.extract_strided_slice %46 {offsets = [48, 0], sizes = [8, 384], strides = [1, 1]} : vector<64x384xf32> to vector<8x384xf32>
    %59 = arith.maximumf %57, %58 : vector<8x384xf32>
    %60 = vector.extract_strided_slice %46 {offsets = [56, 0], sizes = [8, 384], strides = [1, 1]} : vector<64x384xf32> to vector<8x384xf32>
    %61 = arith.maximumf %59, %60 : vector<8x384xf32>
    %c0_43 = arith.constant 0 : index
    %c0_44 = arith.constant 0 : index
    %62 = vector.load %arg5[%c0_43, %c0_44] : memref<8x1xf32, #tpu.memory_space<vmem>>, vector<8x1xf32>
    %63 = vector.broadcast %62 : vector<8x1xf32> to vector<8x384xf32>
    %64 = arith.mulf %61, %63 : vector<8x384xf32>
    %c0_45 = arith.constant 0 : index
    %c0_46 = arith.constant 0 : index
    %65 = vector.load %arg6[%c0_45, %c0_46] : memref<8x1xf32, #tpu.memory_space<vmem>>, vector<8x1xf32>
    %66 = vector.broadcast %65 : vector<8x1xf32> to vector<8x384xf32>
    %67 = arith.addf %64, %66 : vector<8x384xf32>
    %cst_47 = arith.constant 0.000000e+00 : f32
    %68 = vector.broadcast %cst_47 : f32 to vector<8x384xf32>
    %69 = arith.cmpf oge, %67, %68 : vector<8x384xf32>
    %cst_48 = arith.constant 0.00999999977 : f32
    %70 = vector.broadcast %cst_48 : f32 to vector<8x384xf32>
    %71 = arith.mulf %70, %67 : vector<8x384xf32>
    %72 = arith.select %69, %67, %71 : vector<8x384xi1>, vector<8x384xf32>
    %c0_49 = arith.constant 0 : index
    %c0_50 = arith.constant 0 : index
    %c0_51 = arith.constant 0 : index
    %73 = vector.load %arg7[%c0_49, %c0_50, %c0_51] : memref<1x8x384xf32, #tpu.memory_space<vmem>>, vector<1x8x384xf32>
    %74 = vector.shape_cast %73 : vector<1x8x384xf32> to vector<8x384xf32>
    %75 = vector.shape_cast %72 : vector<8x384xf32> to vector<1x8x384xf32>
    tpu.vector_store %arg7[%c0_49, %c0_50, %c0_51], %75 {strides = array<i32>} : memref<1x8x384xf32, #tpu.memory_space<vmem>>, vector<1x8x384xf32>,
    return
  }
  func.func @transform_0(%arg0: i32, %arg1: i32) -> (i32, i32, i32) {
    %c0_i32 = arith.constant 0 : i32
    %c0_i32_0 = arith.constant 0 : i32
    return %arg0, %c0_i32, %arg1 : i32, i32, i32
  }
  func.func @transform_1(%arg0: i32, %arg1: i32) -> (i32, i32, i32) {
    %c1_i32 = arith.constant 1 : i32
    %0 = arith.addi %arg1, %c1_i32 : i32
    %c3_i32 = arith.constant 3 : i32
    %1 = arith.muli %0, %c3_i32 : i32
    %c0_i32 = arith.constant 0 : i32
    %c0_i32_0 = arith.constant 0 : i32
    return %arg0, %c0_i32, %1 : i32, i32, i32
  }
  func.func @transform_2(%arg0: i32, %arg1: i32) -> (i32, i32, i32) {
    %c0_i32 = arith.constant 0 : i32
    %c0_i32_0 = arith.constant 0 : i32
    %c0_i32_1 = arith.constant 0 : i32
    %c0_i32_2 = arith.constant 0 : i32
    return %c0_i32, %c0_i32_0, %c0_i32_1 : i32, i32, i32
  }
  func.func @transform_3(%arg0: i32, %arg1: i32) -> (i32, i32) {
    %c0_i32 = arith.constant 0 : i32
    %c0_i32_0 = arith.constant 0 : i32
    %c0_i32_1 = arith.constant 0 : i32
    return %c0_i32, %c0_i32_0 : i32, i32
  }
  func.func @transform_4(%arg0: i32, %arg1: i32) -> (i32, i32) {
    %c0_i32 = arith.constant 0 : i32
    %c0_i32_0 = arith.constant 0 : i32
    %c0_i32_1 = arith.constant 0 : i32
    return %c0_i32, %c0_i32_0 : i32, i32
  }
  func.func @transform_5(%arg0: i32, %arg1: i32) -> (i32, i32, i32) {
    %c0_i32 = arith.constant 0 : i32
    %c0_i32_0 = arith.constant 0 : i32
    return %arg0, %c0_i32, %arg1 : i32, i32, i32
  }
}

</mosaic_0001>

<bundles_post_ra>
// kernel: _lambda_.1
= control target key start
LH: loop header
LB: loop body
LE: loop exit
PB: predicated region body
PF: predicated region fallthrough
CT: control target
= control target key end

     0   :  { %s5716_s0 = inlined_call_operand.vmem [shape: f32[2,32,896], index: 0, kind: input, shape index: {}, may-alias: {0,1}]   ;;  %s5717_s1 = inlined_call_operand.vmem [shape: f32[2,32,896], index: 1, kind: input, shape index: {}, may-alias: {0,1}]   ;;  %s5718_s2 = inlined_call_operand.vmem [shape: f32[8,64,32], index: 2, kind: input, shape index: {}]   ;;  %s5719_s3 = inlined_call_operand.vmem [shape: f32[8,1], index: 3, kind: input, shape index: {}]   ;;  %s5720_s4 = inlined_call_operand.vmem [shape: f32[8,1], index: 4, kind: input, shape index: {}]   ;;  %s5721_s5 = inlined_call_operand.vmem [shape: f32[2,8,768], index: 5, kind: output, shape index: {}]  }
   0x1   :  { %5725 = sst [smem:[#allocation31_spill]] %s5716_s0 }
   0x2   :  { %s4544_s18 = smov 0   ;;  %s4546_s19 = smov 0  }
   0x3   :  { %s4548_s20 = smov 0   ;;  %s4550_s21 = smov 0  }
   0x4   :  { %s4552_s22 = smov 0   ;;  %s4554_s23 = smov 0  }
   0x5   :  { %s4556_s24 = smov 0   ;;  %s4558_s25 = smov 0  }
   0x6   :  { %s4560_s26 = smov 0  }
   0x7 LB: > { %5726 = sst [smem:[#allocation5_spill]] %s4467_s21  ;;  %s24_s27 = sadd.s32 1, %s4479_s24  ;;  %s4487_s26 = sphi %s4560_s26, %s15_s26   ;;  %s4483_s25 = sphi %s4558_s25, %s5790_s25   ;;  %s4479_s24 = sphi %s4556_s24, %s5789_s24   ;;  %s4475_s23 = sphi %s4554_s23, %s5788_s23   ;;  %s4471_s22 = sphi %s4552_s22, %s5787_s22   ;;  %s4467_s21 = sphi %s4550_s21, %s5782_s21   ;;  %s4463_s20 = sphi %s4548_s20, %s5781_s20   ;;  %s4459_s19 = sphi %s4546_s19, %s5786_s19   ;;  %s4455_s18 = sphi %s4544_s18, %s5785_s18  }
   0x8   : > { %p25_p0 = scmp.ge.s32.totalorder %s24_s27, 2  ;;  %s27_s28 = sadd.s32 1, %s4483_s25 }
   0x9   : > { %p43_p1 = scmp.ne.s32.totalorder %s4467_s21, %s4463_s20  ;;  %p44_p2 = scmp.eq.s32.totalorder %s4487_s26, 0 }
   0xa   : > { %s4594_s29 = scalar_select %p25_p0, 0, %s24_s27  }
   0xb   : > { %s5792_s28 = smov (!%p25_p0, %s27_s28), %s4483_s25  ;;  %s36_s30 = sadd.s32 1, %s4467_s21 }
   0xc   : > { %5727 = sst [smem:[#allocation6_spill]] %s4594_s29  ;;  %p4600_p3 = por %p44_p2, %p43_p1 }
   0xd   : > { %p29_p4 = scmp.ge.s32.totalorder %s5792_s28, 2  ;;  %s32_s7 = ssub.s32 %s4479_s24, %s4594_s29 }
   0xe   : > { %s60_s8 = smul.u32 3, %s24_s27  ;;  %s61_s9 = sadd.s32 1, %s4594_s29 }
   0xf   : > { %s5794_s28 = smov (%p29_p4, %s5792_s28), 0  ;;  %s62_s10 = smul.u32 3, %s61_s9 }
  0x10   : > { %5729 = sst [smem:[#allocation7_spill]] %s5794_s28  ;;  %p75_p5 = scmp.ne.s32.totalorder %s4459_s19, %s4455_s18 }
  0x11   : > { %s31_s11 = ssub.s32 %s4483_s25, %s5794_s28  ;;  %s68_s12 = sadd.s32 1, %s4459_s19 }
  0x12   : > { %s33_s13 = sor.u32 %s32_s7, %s31_s11  ;;  %s64_s14 = ssub.s32 %s60_s8, %s62_s10 }
  0x13   : > { %p34_p6 = scmp.eq.s32.totalorder %s33_s13, 0  ;;  %s65_s15 = sor.u32 %s64_s14, %s31_s11 }
  0x14   : > { %p66_p7 = scmp.eq.s32.totalorder %s65_s15, 0  ;;  %p4616_p8 = por %p75_p5, %p44_p2 }
  0x15   : > { %s4621_s17 = scalar_select %p34_p6, %s4467_s21, %s36_s30  }
  0x16   : > { %s4624_s27 = scalar_select %p66_p7, %s4459_s19, %s68_s12  }
  0x17   : > { %5731 = sst [smem:[#allocation8_spill]] %s4621_s17  ;;  %p3649_p9 = scmp.ge.s32.totalorder %s4487_s26, 4 }
  0x19   : > { %201 = sbr.rel (%p3649_p9) target bundleno = 57 (0x39), region = 28 }
  0x1e   : > { %204 = sbr.rel (!%p4600_p3) target bundleno = 47 (0x2f), region = 32  ;;  %s206_s7 = sand.u32 (%p4600_p3), 1, %s4467_s21  }
  0x1f   : > { %s209_s8 = smul.u32 (%p4600_p3), 3, %s4479_s24  ;;  %s5732_s0 = sld [smem:[#allocation31_spill]] (%p4600_p3) }
  0x20   : > { %s4631_s9 = smul.u32 (%p4600_p3), 96, %s206_s7  ;;  %s4647_s29 = smov (%p4600_p3), 0  }
  0x21   : > { %s4133_s10 = smul.u32 (%p4600_p3), 28, %s4483_s25  ;;  %s4501_s7 = smov (%p4600_p3), 0  }
  0x22   : > { %s208_s15 = scalar_lea.vmem (%p4600_p3), [#allocation3], %s4631_s9  }
  0x23   : > { %s216_s11 = sadd.s32 %s4133_s10, %s209_s8  ;;  %s5733_s6 = smov %s208_s15 }
  0x24   : > { %s3652_s30 = sshll.u32 %s216_s11, 3 }
  0x25   : > { %s4637_s14 = scalar_lea.vmem %s5732_s0, %s3652_s30  }
  0x26   : > { %s5734_s28 = smov %s4637_s14 }
  0x27 LB: >> { %v421_v0 = vld [vmem:[%s4495_s28] sm:$0xff]  ;;  %v423_v1 = vld [vmem:[%s4495_s28 + $0x38] sm:$0xff]  ;;  %v425_v2 = vld [vmem:[%s4495_s28 + $0x70] sm:$0xff]  ;;  %s429_s8 = sadd.s32 1, %s4499_s29  ;;  %s415_s7 = sadd.s32 1, %s4503_s7   ;;  %s4503_s7 = sphi %s4501_s7, %s415_s7   ;;  %s4499_s29 = sphi %s4647_s29, %s5735_s29   ;;  %s4495_s28 = sphi %s5734_s28, %s434_s28   ;;  %s4491_s6 = sphi %s5733_s6, %s435_s6  }
  0x28   : >> { %422 = vst [vmem:[%s4491_s6] sm:$0xff] %v421_v0  ;;  %424 = vst [vmem:[%s4491_s6 + $0x18] sm:$0xff] %v423_v1  ;;  %v427_v3 = vld [vmem:[%s4495_s28 + $0xa8] sm:$0xff]  ;;  %p430_p10 = scmp.ge.s32.totalorder %s429_s8, 3  ;;  %p414_p11 = scmp.ge.s32.totalorder %s415_s7, 3 }
  0x29   : >> { %426 = vst [vmem:[%s4491_s6 + $0x30] sm:$0xff] %v425_v2  ;;  %428 = vst [vmem:[%s4491_s6 + $0x48] sm:$0xff] %v427_v3 }
  0x2a   : >> { %s5796_s8 = smov (%p430_p10, %s429_s8), 0  ;;  %417 = sbr.rel (!%p414_p11) target bundleno = 39 (0x27), region = 223 }
  0x2b   : >> { %s3663_s10 = sshll.u32 %s5796_s8, 3  ;;  %s5735_s29 = smov %s5796_s8 }
  0x2c   : >> { %s434_s28 = scalar_lea.vmem %s4637_s14, %s3663_s10   ;;  %s435_s6 = scalar_lea.vmem %s208_s15, %s3663_s10 [#allocation3]  }
  0x2f PF: > { %648 = sbr.rel (!%p4616_p8) target bundleno = 57 (0x39), region = 98  ;;  %s650_s29 = sand.u32 (%p4616_p8), 1, %s4459_s19  }
  0x30   : > { %s3510_s11 = smul.u32 (%p4616_p8), 3, %s4479_s24  ;;  %s3677_s30 = sshll.u32 (%p4616_p8), %s650_s29, 5 }
  0x31   : > { %s3511_s13 = smul.u32 (%p4616_p8), 28, %s4483_s25  ;;  %s652_s28 = scalar_lea.vmem (%p4616_p8), [#allocation4], %s3677_s30 }
  0x33   : > { %s3512_s12 = sadd.s32 (%p4616_p8), %s3511_s13, %s3510_s11 }
  0x34   : > { %s3678_s10 = sshll.u32 %s3512_s12, 3 }
  0x35   : > { %s3514_s21 = scalar_lea.vmem %s5717_s1, %s3678_s10 }
  0x36   : > { %v3679_v4 = vld [vmem:[%s3514_s21 + $0x18] sm:$0xff]  ;;  %v3680_v5 = vld [vmem:[%s3514_s21 + $0x50] sm:$0xff]  ;;  %v3681_v6 = vld [vmem:[%s3514_s21 + $0x88] sm:$0xff] }
  0x37   : > { %694 = vst [vmem:[%s652_s28] sm:$0xff] %v3679_v4  ;;  %696 = vst [vmem:[%s652_s28 + $0x8] sm:$0xff] %v3680_v5  ;;  %v3682_v7 = vld [vmem:[%s3514_s21 + $0xc0] sm:$0xff] }
  0x38   : > { %698 = vst [vmem:[%s652_s28 + $0x10] sm:$0xff] %v3681_v6  ;;  %700 = vst [vmem:[%s652_s28 + $0x18] sm:$0xff] %v3682_v7 }
  0x39 PF: > { %p3683_p12 = scmp.ge.s32.totalorder %s4487_s26, 1  ;;  %p705_p13 = scmp.lt.s32.totalorder %s4487_s26, 5 }
  0x3b   : > { %p706_p0 = pnand %p3683_p12, %p705_p13 }
  0x3d   : > { %709 = sbr.rel (%p706_p0) target bundleno = 647 (0x287), region = 136 }
  0x42   : > { %s712_s0 = sand.u32 1, %s4463_s20   ;;  %s719_s17 = sand.u32 1, %s4455_s18   ;;  %v4506_v18 = vmov 0.0   ;;  %v4733_v21 = vld [vmem:[%s5718_s2 + $0x40] sm:$0xff]  ;;  %vm921_vm0 = vcmask 261120   ;;  %vm896_vm1 = vcmask 1039360  }
  0x43   : > { %s4134_s16 = smul.u32 96, %s712_s0  ;;  %s3684_s21 = sshll.u32 %s719_s17, 5  ;;  %1010 = vmatprep.mubr.f32.mxu0 %v4506_v18  ;;  %3980 = vmatprep.mubr.msk.f32.mxu1 %vm921_vm0, %v4733_v21  ;;  %v3687_v54 = vld [vmem:[%s5718_s2 + $0x48] sm:$0xff]  ;;  %v3688_v57 = vld [vmem:[%s5718_s2 + $0x50] sm:$0xff]  ;;  %v3689_v58 = vld [vmem:[%s5718_s2 + $0x58] sm:$0xff]  ;;  %vm1447_vm2 = vcmask 973824  }
  0x44   : > { %s4505_s14 = smov 127   ;;  %s721_s18 = scalar_lea.vmem [#allocation4], %s3684_s21  ;;  %v3690_v63 = vld [vmem:[%s5718_s2 + $0x60] sm:$0xff]  ;;  %v3691_v0 = vld [vmem:[%s5718_s2 + $0x68] sm:$0xff]  ;;  %v3692_v5 = vld [vmem:[%s5718_s2 + $0x70] sm:$0xff]  ;;  %vm1779_vm3 = vcmask 965632  }
  0x45   : > { %s4673_s9 = scalar_lea.vmem [#allocation3], %s4134_s16  ;;  %v4698_v13 = vld [vmem:[%s721_s18 + $0x18] sm:$0xff]  ;;  %v4717_v17 = vld [vmem:[%s721_s18 + $0x10] sm:$0xff]  ;;  %v4744_v23 = vld [vmem:[%s721_s18 + $0x8] sm:$0xff]  ;;  %s4507_s6 = smov 119   ;;  %vm2111_vm4 = vcmask 384000  }
  0x46   : > { %v4676_v8 = vld [vmem:[%s4673_s9 + $0x50] sm:$0xff]  ;;  %v4679_v9 = vld [vmem:[%s4673_s9 + $0x48] sm:$0xff]  ;;  %v4686_v10 = vld [vmem:[%s4673_s9 + $0x58] sm:$0xff]  ;;  %s4508_s7 = smov 118   ;;  %s4509_s8 = smov 47   ;;  %vm2443_vm5 = vcmask 375808  }
  0x47   : > { %890 = vrot.lane.b32.xlu0 %v4676_v8, %s4505_s14  ;;  %888 = vrot.lane.b32.xlu1 %v4679_v9, %s4505_s14  ;;  %v4689_v11 = vld [vmem:[%s4673_s9 + $0x38] sm:$0xff]  ;;  %v4696_v12 = vld [vmem:[%s4673_s9 + $0x40] sm:$0xff]  ;;  %s4510_s29 = smov 46   ;;  %s4511_s15 = smov 38   ;;  %vm2775_vm6 = vcmask 310272   ;;  %vm3107_vm7 = vcmask 302080  }
  0x48   : > { %v4705_v14 = vld [vmem:[%s4673_s9 + $0x30] sm:$0xff]  ;;  %v4708_v15 = vld [vmem:[%s4673_s9 + $0x20] sm:$0xff]  ;;  %v4715_v16 = vld [vmem:[%s4673_s9 + $0x28] sm:$0xff]  ;;  %p762_p1 = scmp.lt.s32.totalorder %s4475_s23, 1  ;;  %s761_s11 = smul.u32 3, %s4471_s22 }
  0x49   : > { %v4725_v19 = vld [vmem:[%s4673_s9 + $0x18] sm:$0xff]  ;;  %v4728_v20 = vld [vmem:[%s4673_s9 + $0x8] sm:$0xff]  ;;  %v4742_v22 = vld [vmem:[%s4673_s9 + $0x10] sm:$0xff] }
  0x4a   : > { %v4750_v24 = vld [vmem:[%s721_s18] sm:$0xff]  ;;  %v3693_v6 = vld [vmem:[%s5718_s2 + $0x78] sm:$0xff]  ;;  %s5798_s23 = smov (!%p762_p1, %s4475_s23), 1  ;;  %p5663_p2 = scmp.lt.s32.totalorder %s761_s11, 5 }
  0x4b   : > { %892 = vrot.lane.b32.xlu0 %v4686_v10, %s4505_s14  ;;  %882 = vrot.lane.b32.xlu1 %v4689_v11, %s4505_s14  ;;  %v4753_v25 = vld [vmem:[%s4673_s9] sm:$0xff] }
  0x4c   : > { %s5800_s11 = smov (!%p5663_p2, %s761_s11), 5 }
  0x4f   : > { %884 = vrot.lane.b32.xlu0 %v4696_v12, %s4505_s14  ;;  %894 = vrot.lane.b32.xlu1 %v4698_v13, %s4505_s14 }
  0x53   : > { %880 = vrot.lane.b32.xlu0 %v4705_v14, %s4505_s14  ;;  %874 = vrot.lane.b32.xlu1 %v4708_v15, %s4505_s14 }
  0x57   : > { %876 = vrot.lane.b32.xlu0 %v4715_v16, %s4505_s14  ;;  %886 = vrot.lane.b32.xlu1 %v4717_v17, %s4505_s14 }
  0x5b   : > { %872 = vrot.lane.b32.xlu0 %v4725_v19, %s4505_s14  ;;  %866 = vrot.lane.b32.xlu1 %v4728_v20, %s4505_s14 }
  0x5f   : > { %868 = vrot.lane.b32.xlu0 %v4742_v22, %s4505_s14  ;;  %878 = vrot.lane.b32.xlu1 %v4744_v23, %s4505_s14 }
  0x63   : > { %870 = vrot.lane.b32.xlu1 %v4750_v24, %s4505_s14  ;;  %864 = vrot.lane.b32.xlu0 %v4753_v25, %s4505_s14 }
  0x67   : > { %1443 = vrot.lane.b32.xlu1 %v4686_v10, %s4507_s6  ;;  %1441 = vrot.lane.b32.xlu0 %v4676_v8, %s4507_s6 }
  0x6b   : > { %1433 = vrot.lane.b32.xlu1 %v4689_v11, %s4507_s6  ;;  %1439 = vrot.lane.b32.xlu0 %v4679_v9, %s4507_s6 }
  0x6f   : > { %1445 = vrot.lane.b32.xlu1 %v4698_v13, %s4507_s6  ;;  %1435 = vrot.lane.b32.xlu0 %v4696_v12, %s4507_s6 }
  0x73   : > { %1425 = vrot.lane.b32.xlu1 %v4708_v15, %s4507_s6  ;;  %1431 = vrot.lane.b32.xlu0 %v4705_v14, %s4507_s6 }
  0x77   : > { %1437 = vrot.lane.b32.xlu1 %v4717_v17, %s4507_s6  ;;  %1427 = vrot.lane.b32.xlu0 %v4715_v16, %s4507_s6 }
  0x7b   : > { %1417 = vrot.lane.b32.xlu1 %v4728_v20, %s4507_s6  ;;  %1423 = vrot.lane.b32.xlu0 %v4725_v19, %s4507_s6 }
  0x7f   : > { %1429 = vrot.lane.b32.xlu1 %v4744_v23, %s4507_s6  ;;  %1419 = vrot.lane.b32.xlu0 %v4742_v22, %s4507_s6 }
  0x83   : > { %1421 = vrot.lane.b32.xlu1 %v4750_v24, %s4507_s6  ;;  %1415 = vrot.lane.b32.xlu0 %v4753_v25, %s4507_s6  ;;  %s4512_s6 = smov 37  }
  0x87   : > { %1775 = vrot.lane.b32.xlu1 %v4686_v10, %s4508_s7  ;;  %1773 = vrot.lane.b32.xlu0 %v4676_v8, %s4508_s7 }
  0x8b   : > { %1765 = vrot.lane.b32.xlu1 %v4689_v11, %s4508_s7  ;;  %1771 = vrot.lane.b32.xlu0 %v4679_v9, %s4508_s7 }
  0x8f   : > { %1763 = vrot.lane.b32.xlu1 %v4705_v14, %s4508_s7  ;;  %1767 = vrot.lane.b32.xlu0 %v4696_v12, %s4508_s7 }
  0x93   : > { %1759 = vrot.lane.b32.xlu1 %v4715_v16, %s4508_s7  ;;  %1757 = vrot.lane.b32.xlu0 %v4708_v15, %s4508_s7 }
  0x97   : > { %1749 = vrot.lane.b32.xlu1 %v4728_v20, %s4508_s7  ;;  %1755 = vrot.lane.b32.xlu0 %v4725_v19, %s4508_s7 }
  0x9b   : > { %1747 = vrot.lane.b32.xlu1 %v4753_v25, %s4508_s7  ;;  %1751 = vrot.lane.b32.xlu0 %v4742_v22, %s4508_s7 }
  0x9f   : > { %1769 = vrot.lane.b32.xlu1 %v4717_v17, %s4508_s7  ;;  %1777 = vrot.lane.b32.xlu0 %v4698_v13, %s4508_s7 }
  0xa3   : > { %1753 = vrot.lane.b32.xlu1 %v4750_v24, %s4508_s7  ;;  %1761 = vrot.lane.b32.xlu0 %v4744_v23, %s4508_s7 }
  0xa7   : > { %2107 = vrot.lane.b32.xlu1 %v4686_v10, %s4509_s8  ;;  %2105 = vrot.lane.b32.xlu0 %v4676_v8, %s4509_s8 }
  0xab   : > { %2097 = vrot.lane.b32.xlu1 %v4689_v11, %s4509_s8  ;;  %2103 = vrot.lane.b32.xlu0 %v4679_v9, %s4509_s8 }
  0xaf   : > { %2109 = vrot.lane.b32.xlu1 %v4698_v13, %s4509_s8  ;;  %2099 = vrot.lane.b32.xlu0 %v4696_v12, %s4509_s8 }
  0xb3   : > { %2089 = vrot.lane.b32.xlu1 %v4708_v15, %s4509_s8  ;;  %2095 = vrot.lane.b32.xlu0 %v4705_v14, %s4509_s8 }
  0xb7   : > { %2101 = vrot.lane.b32.xlu1 %v4717_v17, %s4509_s8  ;;  %2091 = vrot.lane.b32.xlu0 %v4715_v16, %s4509_s8 }
  0xb9   : > { %v891_v26 = vpop.permute.xlu0 %890  ;;  %v889_v27 = vpop.permute.xlu1 %888 }
  0xba   : > { %v906_v31 = vsel %vm896_vm1, %v889_v27, %v891_v26 }
  0xbb   : > { %2081 = vrot.lane.b32.xlu1 %v4728_v20, %s4509_s8  ;;  %2087 = vrot.lane.b32.xlu0 %v4725_v19, %s4509_s8 }
  0xbd   : > { %v893_v28 = vpop.permute.xlu0 %892  ;;  %v883_v29 = vpop.permute.xlu1 %882 }
  0xbe   : > { %v907_v30 = vsel %vm896_vm1, %v891_v26, %v893_v28  ;;  %v815_v26 = vld [vmem:[%s5718_s2] sm:$0xff] }
  0xbf   : > { %970 = vmatprep.subr.mxu0 %v907_v30  ;;  %2093 = vrot.lane.b32.xlu1 %v4744_v23, %s4509_s8 }
  0xc0   : > { %2083 = vrot.lane.b32.xlu0 %v4742_v22, %s4509_s8  ;;  %971 = vmatpush1.msra.mxu0 %v906_v31 }
  0xc1   : > { %v885_v32 = vpop.permute.xlu0 %884  ;;  %v895_v33 = vpop.permute.xlu1 %894 }
  0xc2   : > { %v904_v34 = vsel %vm896_vm1, %v883_v29, %v885_v32  ;;  %v908_v35 = vsel %vm896_vm1, %v893_v28, %v895_v33 }
  0xc3   : > { %972 = vmatprep.subr.mxu0 %v904_v34  ;;  %3972 = vmatprep.subr.mxu1 %v908_v35 }
  0xc4   : > { %2085 = vrot.lane.b32.xlu1 %v4750_v24, %s4509_s8  ;;  %2079 = vrot.lane.b32.xlu0 %v4753_v25, %s4509_s8 }
  0xc5   : > { %3973 = vmatpush3.msra.mxu1 %v908_v35  ;;  %v881_v36 = vpop.permute.xlu0 %880  ;;  %v875_v37 = vpop.permute.xlu1 %874 }
  0xc6   : > { %v903_v38 = vsel %vm896_vm1, %v881_v36, %v883_v29  ;;  %v817_v36 = vld [vmem:[%s5718_s2 + $0x10] sm:$0xff] }
  0xc7   : > { %973 = vmatpush1.msra.mxu0 %v903_v38 }
  0xc8   : > { %2439 = vrot.lane.b32.xlu1 %v4686_v10, %s4510_s29  ;;  %2437 = vrot.lane.b32.xlu0 %v4676_v8, %s4510_s29 }
  0xc9   : > { %v877_v39 = vpop.permute.xlu0 %876  ;;  %v887_v40 = vpop.permute.xlu1 %886 }
  0xca   : > { %v901_v41 = vsel %vm896_vm1, %v875_v37, %v877_v39  ;;  %v905_v42 = vsel %vm896_vm1, %v885_v32, %v887_v40  ;;  %v816_v32 = vld [vmem:[%s5718_s2 + $0x8] sm:$0xff]  ;;  %v818_v40 = vld [vmem:[%s5718_s2 + $0x18] sm:$0xff] }
  0xcb   : > { %974 = vmatprep.subr.mxu0 %v901_v41  ;;  %3974 = vmatprep.subr.mxu1 %v905_v42 }
  0xcc   : > { %2429 = vrot.lane.b32.xlu1 %v4689_v11, %s4510_s29  ;;  %2435 = vrot.lane.b32.xlu0 %v4679_v9, %s4510_s29 }
  0xcd   : > { %3975 = vmatpush3.msra.mxu1 %v905_v42  ;;  %v873_v43 = vpop.permute.xlu0 %872  ;;  %v867_v44 = vpop.permute.xlu1 %866 }
  0xce   : > { %v900_v45 = vsel %vm896_vm1, %v873_v43, %v875_v37 }
  0xcf   : > { %975 = vmatpush1.msra.mxu0 %v900_v45 }
  0xd0   : > { %2427 = vrot.lane.b32.xlu1 %v4705_v14, %s4510_s29  ;;  %2431 = vrot.lane.b32.xlu0 %v4696_v12, %s4510_s29 }
  0xd1   : > { %v869_v46 = vpop.permute.xlu0 %868  ;;  %v879_v47 = vpop.permute.xlu1 %878 }
  0xd2   : > { %v898_v48 = vsel %vm896_vm1, %v867_v44, %v869_v46  ;;  %v902_v49 = vsel %vm896_vm1, %v877_v39, %v879_v47 }
  0xd3   : > { %976 = vmatprep.subr.mxu0 %v898_v48  ;;  %3976 = vmatprep.subr.mxu1 %v902_v49 }
  0xd4   : > { %2423 = vrot.lane.b32.xlu1 %v4715_v16, %s4510_s29  ;;  %2421 = vrot.lane.b32.xlu0 %v4708_v15, %s4510_s29 }
  0xd5   : > { %3977 = vmatpush3.msra.mxu1 %v902_v49  ;;  %v871_v50 = vpop.permute.xlu1 %870  ;;  %v865_v51 = vpop.permute.xlu0 %864 }
  0xd6   : > { %v899_v52 = vsel %vm896_vm1, %v869_v46, %v871_v50  ;;  %v897_v53 = vsel %vm896_vm1, %v865_v51, %v867_v44  ;;  %v819_v44 = vld [vmem:[%s5718_s2 + $0x20] sm:$0xff]  ;;  %v820_v51 = vld [vmem:[%s5718_s2 + $0x28] sm:$0xff] }
  0xd7   : > { %3978 = vmatprep.subr.mxu1 %v899_v52  ;;  %977 = vmatpush1.msra.mxu0 %v897_v53 }
  0xd8   : > { %2413 = vrot.lane.b32.xlu1 %v4728_v20, %s4510_s29  ;;  %2419 = vrot.lane.b32.xlu0 %v4725_v19, %s4510_s29 }
  0xd9   : > { %3694 = vmatmul.mubr.msk.f32.vlgmr.msra.gmra.mxu0 %vm921_vm0, %v4733_v21  ;;  %3979 = vmatpush3.msra.mxu1 %v899_v52  ;;  %v1444_v55 = vpop.permute.xlu1 %1443  ;;  %v4860_v56 = vpop.permute.xlu0 %1441 }
  0xda   : > { %3992 = vmatprep.subr.mxu0 %v4686_v10  ;;  %3981 = vmatmul.mubr.msk.f32.vlgmr.msra.gmra.mxu1 %vm921_vm0, %v3687_v54  ;;  %v1458_v3 = vsel %vm1447_vm2, %v4860_v56, %v1444_v55 }
  0xdb   : > { %3993 = vmatpush3.msra.mxu0 %v4686_v10  ;;  %1212 = vmatprep.subr.mxu1 %v4676_v8 }
  0xdc   : > { %3994 = vmatprep.subr.mxu0 %v4696_v12  ;;  %2411 = vrot.lane.b32.xlu1 %v4753_v25, %s4510_s29 }
  0xdd   : > { %2415 = vrot.lane.b32.xlu0 %v4742_v22, %s4510_s29  ;;  %1016 = vmatprep.mubr.f32.mxu0 %v4506_v18  ;;  %v4878_v59 = vpop.permute.xlu1 %1433  ;;  %v4880_v60 = vpop.permute.xlu0 %1439 }
  0xde   : > { %3995 = vmatpush3.msra.mxu0 %v4696_v12  ;;  %3983 = vmatprep.mubr.msk.f32.mxu1 %vm921_vm0, %v3688_v57  ;;  %v1457_v45 = vsel %vm1447_vm2, %v4880_v60, %v4860_v56  ;;  %v822_v60 = vld [vmem:[%s5718_s2 + $0x38] sm:$0xff] }
  0xdf   : > { %3695 = vmatmul.mubr.msk.f32.gmra.mxu0 %vm921_vm0, %v3687_v54  ;;  %1213 = vmatpush1.msra.mxu1 %v4679_v9 }
  0xe0   : > { %3996 = vmatprep.subr.mxu0 %v4715_v16  ;;  %3984 = vmatmul.mubr.msk.f32.gmra.mxu1 %vm921_vm0, %v3689_v58 }
  0xe1   : > { %1214 = vmatprep.subr.mxu1 %v4689_v11  ;;  %3997 = vmatpush3.msra.mxu0 %v4715_v16  ;;  %v1446_v61 = vpop.permute.xlu1 %1445  ;;  %v4890_v62 = vpop.permute.xlu0 %1435 }
  0xe2   : > { %1215 = vmatpush1.msra.mxu1 %v4705_v14  ;;  %3998 = vmatprep.subr.mxu0 %v4742_v22  ;;  %v1459_v4 = vsel %vm1447_vm2, %v1444_v55, %v1446_v61  ;;  %v1455_v46 = vsel %vm1447_vm2, %v4878_v59, %v4890_v62  ;;  %v3726_v61 = vld [vmem:[%s5718_s2 + $0x80] sm:$0xff] }
  0xe3   : > { %1216 = vmatprep.subr.mxu1 %v4708_v15  ;;  %2433 = vrot.lane.b32.xlu1 %v4717_v17, %s4510_s29 }
  0xe4   : > { %2441 = vrot.lane.b32.xlu0 %v4698_v13, %s4510_s29  ;;  %1022 = vmatprep.mubr.f32.mxu0 %v4506_v18 }
  0xe5   : > { %3999 = vmatpush3.msra.mxu0 %v4742_v22  ;;  %3986 = vmatprep.mubr.msk.f32.mxu1 %vm921_vm0, %v3690_v63  ;;  %v4908_v1 = vpop.permute.xlu1 %1425  ;;  %v4910_v2 = vpop.permute.xlu0 %1431 }
  0xe6   : > { %3696 = vmatmul.mubr.msk.f32.gmra.mxu0 %vm921_vm0, %v3688_v57  ;;  %1217 = vmatpush1.msra.mxu1 %v4725_v19  ;;  %v1454_v47 = vsel %vm1447_vm2, %v4910_v2, %v4878_v59  ;;  %v821_v57 = vld [vmem:[%s5718_s2 + $0x30] sm:$0xff] }
  0xe7   : > { %1520 = vmatprep.subr.mxu0 %v1458_v3  ;;  %3987 = vmatmul.mubr.msk.f32.gmra.mxu1 %vm921_vm0, %v3691_v0 }
  0xe8   : > { %1218 = vmatprep.subr.mxu1 %v4728_v20  ;;  %2417 = vrot.lane.b32.xlu1 %v4750_v24, %s4510_s29 }
  0xe9   : > { %1219 = vmatpush1.msra.mxu1 %v4753_v25  ;;  %2425 = vrot.lane.b32.xlu0 %v4744_v23, %s4510_s29  ;;  %v1438_v7 = vpop.permute.xlu1 %1437  ;;  %v4930_v21 = vpop.permute.xlu0 %1427 }
  0xea   : > { %1028 = vmatprep.mubr.f32.mxu0 %v4506_v18  ;;  %4012 = vmatprep.subr.mxu1 %v1459_v4  ;;  %v1456_v29 = vsel %vm1447_vm2, %v4890_v62, %v1438_v7  ;;  %v1452_v50 = vsel %vm1447_vm2, %v4908_v1, %v4930_v21 }
  0xeb   : > { %3697 = vmatmul.mubr.msk.f32.gmra.mxu0 %vm921_vm0, %v3689_v58  ;;  %3989 = vmatprep.mubr.msk.f32.mxu1 %vm921_vm0, %v3692_v5 }
  0xec   : > { %3990 = vmatmul.mubr.msk.f32.gmra.mxu1 %vm921_vm0, %v3693_v6  ;;  %2771 = vrot.lane.b32.xlu1 %v4686_v10, %s4511_s15 }
  0xed   : > { %2769 = vrot.lane.b32.xlu0 %v4676_v8, %s4511_s15  ;;  %1034 = vmatprep.mubr.f32.mxu0 %v4506_v18  ;;  %v4944_v27 = vpop.permute.xlu1 %1417  ;;  %v4946_v28 = vpop.permute.xlu0 %1423 }
  0xee   : > { %1252 = vmatprep.mubr.f32.mxu1 %v4506_v18  ;;  %v1451_v52 = vsel %vm1447_vm2, %v4946_v28, %v4908_v1 }
  0xef   : > { %3698 = vmatmul.mubr.msk.f32.gmra.mxu0 %vm921_vm0, %v3690_v63 }
  0xf0   : > { %3710 = vmatmul.mubr.msk.f32.vlgmr.msra.gmra.mxu1 %vm921_vm0, %v815_v26  ;;  %2761 = vrot.lane.b32.xlu1 %v4689_v11, %s4511_s15 }
  0xf1   : > { %4013 = vmatpush3.msra.mxu1 %v1459_v4  ;;  %2767 = vrot.lane.b32.xlu0 %v4679_v9, %s4511_s15  ;;  %v1430_v30 = vpop.permute.xlu1 %1429  ;;  %v4957_v31 = vpop.permute.xlu0 %1419 }
  0xf2   : > { %1040 = vmatprep.mubr.f32.mxu0 %v4506_v18  ;;  %4014 = vmatprep.subr.mxu1 %v1456_v29  ;;  %v1453_v33 = vsel %vm1447_vm2, %v4930_v21, %v1430_v30  ;;  %v1449_v53 = vsel %vm1447_vm2, %v4944_v27, %v4957_v31  ;;  %v3732_v30 = vld [vmem:[%s5718_s2 + $0xb0] sm:$0xff] }
  0xf3   : > { %3699 = vmatmul.mubr.msk.f32.gmra.mxu0 %vm921_vm0, %v3691_v0  ;;  %1258 = vmatprep.mubr.f32.mxu1 %v4506_v18  ;;  %v3727_v0 = vld [vmem:[%s5718_s2 + $0x88] sm:$0xff] }
  0xf4   : > { %4015 = vmatpush3.msra.mxu1 %v1456_v29  ;;  %2773 = vrot.lane.b32.xlu1 %v4698_v13, %s4511_s15 }
  0xf5   : > { %3711 = vmatmul.mubr.msk.f32.gmra.mxu1 %vm921_vm0, %v816_v32  ;;  %2763 = vrot.lane.b32.xlu0 %v4696_v12, %s4511_s15  ;;  %v1422_v34 = vpop.permute.xlu1 %1421  ;;  %v1416_v35 = vpop.permute.xlu0 %1415 }
  0xf6   : > { %1046 = vmatprep.mubr.f32.mxu0 %v4506_v18  ;;  %1264 = vmatprep.mubr.f32.mxu1 %v4506_v18  ;;  %v1450_v37 = vsel %vm1447_vm2, %v4957_v31, %v1422_v34  ;;  %v1448_v56 = vsel %vm1447_vm2, %v1416_v35, %v4944_v27  ;;  %v3731_v27 = vld [vmem:[%s5718_s2 + $0xa8] sm:$0xff]  ;;  %v3733_v31 = vld [vmem:[%s5718_s2 + $0xb8] sm:$0xff]  ;;  %v3750_v34 = vld [vmem:[%s5718_s2 + $0xc0] sm:$0xff] }
  0xf7   : > { %3700 = vmatmul.mubr.msk.f32.gmra.mxu0 %vm921_vm0, %v3692_v5  ;;  %4016 = vmatprep.subr.mxu1 %v1453_v33  ;;  %v3729_v5 = vld [vmem:[%s5718_s2 + $0x98] sm:$0xff] }
  0xf8   : > { %2753 = vrot.lane.b32.xlu1 %v4708_v15, %s4511_s15  ;;  %1052 = vmatprep.mubr.f32.mxu0 %v4506_v18 }
  0xf9   : > { %3712 = vmatmul.mubr.msk.f32.gmra.mxu1 %vm921_vm0, %v817_v36  ;;  %2759 = vrot.lane.b32.xlu0 %v4705_v14, %s4511_s15  ;;  %v4986_v38 = vpop.permute.xlu1 %1775  ;;  %v4988_v39 = vpop.permute.xlu0 %1773 }
  0xfa   : > { %1270 = vmatprep.mubr.f32.mxu1 %v4506_v18  ;;  %4017 = vmatpush3.msra.mxu1 %v1453_v33  ;;  %v1790_v41 = vsel %vm1779_vm3, %v4988_v39, %v4986_v38 }
  0xfb   : > { %3701 = vmatmul.mubr.msk.f32.gmra.mxu0 %vm921_vm0, %v3693_v6  ;;  %4018 = vmatprep.subr.mxu1 %v1450_v37 }
  0xfc   : > { %2765 = vrot.lane.b32.xlu1 %v4717_v17, %s4511_s15  ;;  %4000 = vmatprep.mubr.msk.f32.mxu0 %vm921_vm0, %v815_v26  ;;  %v3730_v26 = vld [vmem:[%s5718_s2 + $0xa0] sm:$0xff] }
  0xfd   : > { %3713 = vmatmul.mubr.msk.f32.gmra.mxu1 %vm921_vm0, %v818_v40  ;;  %2755 = vrot.lane.b32.xlu0 %v4715_v16, %s4511_s15  ;;  %v5004_v42 = vpop.permute.xlu1 %1765  ;;  %v1772_v43 = vpop.permute.xlu0 %1771 }
  0xfe   : > { %1276 = vmatprep.mubr.f32.mxu1 %v4506_v18  ;;  %4019 = vmatpush3.msra.mxu1 %v1450_v37  ;;  %v1789_v1 = vsel %vm1779_vm3, %v1772_v43, %v4988_v39  ;;  %v3751_v39 = vld [vmem:[%s5718_s2 + $0xc8] sm:$0xff]  ;;  %v3753_v43 = vld [vmem:[%s5718_s2 + $0xd8] sm:$0xff] }
  0xff   : > { %4001 = vmatmul.mubr.msk.f32.vlgmr.msra.gmra.mxu0 %vm921_vm0, %v816_v32  ;;  %1852 = vmatprep.subr.mxu1 %v1790_v41  ;;  %v3752_v41 = vld [vmem:[%s5718_s2 + $0xd0] sm:$0xff] }
 0x100   : > { %1521 = vmatpush1.msra.mxu0 %v1457_v45  ;;  %2745 = vrot.lane.b32.xlu1 %v4728_v20, %s4511_s15 }
 0x101   : > { %1522 = vmatprep.subr.mxu0 %v1455_v46  ;;  %3714 = vmatmul.mubr.msk.f32.gmra.mxu1 %vm921_vm0, %v819_v44  ;;  %v1764_v48 = vpop.permute.xlu1 %1763  ;;  %v5023_v49 = vpop.permute.xlu0 %1767 }
 0x102   : > { %1523 = vmatpush1.msra.mxu0 %v1454_v47  ;;  %2751 = vrot.lane.b32.xlu0 %v4725_v19, %s4511_s15  ;;  %v1787_v3 = vsel %vm1779_vm3, %v5004_v42, %v5023_v49  ;;  %v1786_v4 = vsel %vm1779_vm3, %v1764_v48, %v5004_v42 }
 0x103   : > { %4003 = vmatprep.mubr.msk.f32.mxu0 %vm921_vm0, %v817_v36  ;;  %1524 = vmatprep.subr.mxu0 %v1452_v50 }
 0x104   : > { %1282 = vmatprep.mubr.f32.mxu1 %v4506_v18  ;;  %4004 = vmatmul.mubr.msk.f32.gmra.mxu0 %vm921_vm0, %v818_v40 }
 0x105   : > { %1525 = vmatpush1.msra.mxu0 %v1451_v52  ;;  %3715 = vmatmul.mubr.msk.f32.gmra.mxu1 %vm921_vm0, %v820_v51  ;;  %v5043_v54 = vpop.permute.xlu1 %1759  ;;  %v1758_v55 = vpop.permute.xlu0 %1757 }
 0x106   : > { %1526 = vmatprep.subr.mxu0 %v1449_v53  ;;  %2757 = vrot.lane.b32.xlu1 %v4744_v23, %s4511_s15 }
 0x107   : > { %1527 = vmatpush1.msra.mxu0 %v1448_v56  ;;  %2747 = vrot.lane.b32.xlu0 %v4742_v22, %s4511_s15 }
 0x108   : > { %4006 = vmatprep.mubr.msk.f32.mxu0 %vm921_vm0, %v819_v44  ;;  %1288 = vmatprep.mubr.f32.mxu1 %v4506_v18 }
 0x109   : > { %4007 = vmatmul.mubr.msk.f32.gmra.mxu0 %vm921_vm0, %v820_v51  ;;  %3716 = vmatmul.mubr.msk.f32.gmra.mxu1 %vm921_vm0, %v821_v57  ;;  %v1750_v58 = vpop.permute.xlu1 %1749  ;;  %v1756_v59 = vpop.permute.xlu0 %1755  ;;  %v3755_v51 = vld [vmem:[%s5718_s2 + $0xe8] sm:$0xff] }
 0x10a   : > { %2749 = vrot.lane.b32.xlu1 %v4750_v24, %s4511_s15  ;;  %4009 = vmatprep.mubr.msk.f32.mxu0 %vm921_vm0, %v821_v57  ;;  %v1783_v21 = vsel %vm1779_vm3, %v1756_v59, %v1758_v55  ;;  %v3756_v57 = vld [vmem:[%s5718_s2 + $0xf0] sm:$0xff] }
 0x10b   : > { %2743 = vrot.lane.b32.xlu0 %v4753_v25, %s4511_s15  ;;  %1294 = vmatprep.mubr.f32.mxu1 %v4506_v18 }
 0x10d   : > { %4010 = vmatmul.mubr.msk.f32.gmra.mxu0 %vm921_vm0, %v822_v60  ;;  %3717 = vmatmul.mubr.msk.f32.gmra.mxu1 %vm921_vm0, %v822_v60  ;;  %v1748_v62 = vpop.permute.xlu1 %1747  ;;  %v5072_v63 = vpop.permute.xlu0 %1751  ;;  %v3757_v60 = vld [vmem:[%s5718_s2 + $0xf8] sm:$0xff] }
 0x10e   : > { %3103 = vrot.lane.b32.xlu1 %v4686_v10, %s4512_s6  ;;  %1560 = vmatprep.mubr.f32.mxu0 %v4506_v18  ;;  %v1780_v28 = vsel %vm1779_vm3, %v1748_v62, %v1750_v58 }
 0x10f   : > { %3101 = vrot.lane.b32.xlu0 %v4676_v8, %s4512_s6  ;;  %4020 = vmatprep.mubr.msk.f32.mxu1 %vm921_vm0, %v3726_v61  ;;  %v3728_v8 = vld [vmem:[%s5718_s2 + $0x90] sm:$0xff] }
 0x111   : > { %3734 = vmatmul.mubr.msk.f32.vlgmr.msra.gmra.mxu0 %vm921_vm0, %v3726_v61  ;;  %4021 = vmatmul.mubr.msk.f32.vlgmr.msra.gmra.mxu1 %vm921_vm0, %v3727_v0  ;;  %v1770_v2 = vpop.permute.xlu1 %1769  ;;  %v1778_v10 = vpop.permute.xlu0 %1777 }
 0x112   : > { %1853 = vmatpush1.msra.mxu1 %v1789_v1  ;;  %3093 = vrot.lane.b32.xlu1 %v4689_v11, %s4512_s6  ;;  %v1784_v11 = vsel %vm1779_vm3, %v1758_v55, %v5043_v54  ;;  %v3775_v1 = vld [vmem:[%s5718_s2 + $0x108] sm:$0xff] }
 0x113   : > { %1854 = vmatprep.subr.mxu1 %v1787_v3  ;;  %3099 = vrot.lane.b32.xlu0 %v4679_v9, %s4512_s6  ;;  %v1781_v9 = vsel %vm1779_vm3, %v1750_v58, %v5072_v63  ;;  %v3776_v3 = vld [vmem:[%s5718_s2 + $0x110] sm:$0xff] }
 0x114   : > { %1566 = vmatprep.mubr.f32.mxu0 %v4506_v18  ;;  %1855 = vmatpush1.msra.mxu1 %v1786_v4 }
 0x115   : > { %3735 = vmatmul.mubr.msk.f32.gmra.mxu0 %vm921_vm0, %v3727_v0  ;;  %4023 = vmatprep.mubr.msk.f32.mxu1 %vm921_vm0, %v3728_v8  ;;  %v1754_v6 = vpop.permute.xlu1 %1753  ;;  %v1762_v7 = vpop.permute.xlu0 %1761  ;;  %v3774_v0 = vld [vmem:[%s5718_s2 + $0x100] sm:$0xff] }
 0x116   : > { %1856 = vmatprep.subr.mxu1 %v1784_v11  ;;  %4024 = vmatmul.mubr.msk.f32.gmra.mxu1 %vm921_vm0, %v3729_v5  ;;  %v3777_v11 = vld [vmem:[%s5718_s2 + $0x118] sm:$0xff] }
 0x117   : > { %1857 = vmatpush1.msra.mxu1 %v1783_v21  ;;  %3091 = vrot.lane.b32.xlu1 %v4705_v14, %s4512_s6  ;;  %v3778_v21 = vld [vmem:[%s5718_s2 + $0x120] sm:$0xff] }
 0x118   : > { %3095 = vrot.lane.b32.xlu0 %v4696_v12, %s4512_s6  ;;  %1572 = vmatprep.mubr.f32.mxu0 %v4506_v18  ;;  %v1791_v12 = vsel %vm1779_vm3, %v4986_v38, %v1778_v10 }
 0x119   : > { %1858 = vmatprep.subr.mxu1 %v1781_v9  ;;  %3736 = vmatmul.mubr.msk.f32.gmra.mxu0 %vm921_vm0, %v3728_v8  ;;  %v2108_v29 = vpop.permute.xlu1 %2107  ;;  %v5124_v14 = vpop.permute.xlu0 %2105 }
 0x11a   : > { %4026 = vmatprep.mubr.msk.f32.mxu1 %vm921_vm0, %v3730_v26  ;;  %1578 = vmatprep.mubr.f32.mxu0 %v4506_v18 }
 0x11b   : > { %4027 = vmatmul.mubr.msk.f32.gmra.mxu1 %vm921_vm0, %v3731_v27  ;;  %3087 = vrot.lane.b32.xlu1 %v4715_v16, %s4512_s6  ;;  %v1788_v16 = vsel %vm1779_vm3, %v5023_v49, %v1770_v2 }
 0x11c   : > { %3085 = vrot.lane.b32.xlu0 %v4708_v15, %s4512_s6  ;;  %1859 = vmatpush1.msra.mxu1 %v1780_v28  ;;  %v1785_v15 = vsel %vm1779_vm3, %v5043_v54, %v1762_v7 }
 0x11d   : > { %4032 = vmatprep.subr.mxu0 %v1791_v12  ;;  %3737 = vmatmul.mubr.msk.f32.gmra.mxu0 %vm921_vm0, %v3729_v5  ;;  %v5142_v32 = vpop.permute.xlu1 %2097  ;;  %v5144_v33 = vpop.permute.xlu0 %2103 }
 0x11e   : > { %4029 = vmatprep.mubr.msk.f32.mxu1 %vm921_vm0, %v3732_v30  ;;  %4033 = vmatpush3.msra.mxu0 %v1791_v12  ;;  %v2121_v46 = vsel %vm2111_vm4, %v5144_v33, %v5124_v14  ;;  %v3781_v12 = vld [vmem:[%s5718_s2 + $0x138] sm:$0xff] }
 0x11f   : > { %4034 = vmatprep.subr.mxu0 %v1788_v16  ;;  %4030 = vmatmul.mubr.msk.f32.gmra.mxu1 %vm921_vm0, %v3733_v31 }
 0x120   : > { %4035 = vmatpush3.msra.mxu0 %v1788_v16  ;;  %3077 = vrot.lane.b32.xlu1 %v4728_v20, %s4512_s6  ;;  %v1782_v20 = vsel %vm1779_vm3, %v5072_v63, %v1754_v6  ;;  %v3798_v16 = vld [vmem:[%s5718_s2 + $0x140] sm:$0xff] }
 0x121   : > { %3083 = vrot.lane.b32.xlu0 %v4725_v19, %s4512_s6  ;;  %1584 = vmatprep.mubr.f32.mxu0 %v4506_v18  ;;  %v2110_v35 = vpop.permute.xlu1 %2109  ;;  %v2100_v36 = vpop.permute.xlu0 %2099  ;;  %v2122_v19 = vsel %vm2111_vm4, %v5124_v14, %v2108_v29 }
 0x122   : > { %4036 = vmatprep.subr.mxu0 %v1785_v15  ;;  %3738 = vmatmul.mubr.msk.f32.gmra.mxu0 %vm921_vm0, %v3730_v26  ;;  %v2119_v47 = vsel %vm2111_vm4, %v5142_v32, %v2100_v36  ;;  %v3779_v26 = vld [vmem:[%s5718_s2 + $0x128] sm:$0xff] }
 0x123   : > { %1892 = vmatprep.mubr.f32.mxu1 %v4506_v18  ;;  %4037 = vmatpush3.msra.mxu0 %v1785_v15 }
 0x124   : > { %4038 = vmatprep.subr.mxu0 %v1782_v20  ;;  %3758 = vmatmul.mubr.msk.f32.vlgmr.msra.gmra.mxu1 %vm921_vm0, %v3750_v34 }
 0x125   : > { %4039 = vmatpush3.msra.mxu0 %v1782_v20  ;;  %3075 = vrot.lane.b32.xlu1 %v4753_v25, %s4512_s6  ;;  %v2090_v37 = vpop.permute.xlu1 %2089  ;;  %v2096_v38 = vpop.permute.xlu0 %2095  ;;  %v2123_v25 = vsel %vm2111_vm4, %v2108_v29, %v2110_v35  ;;  %v3780_v29 = vld [vmem:[%s5718_s2 + $0x130] sm:$0xff]  ;;  %v3799_v35 = vld [vmem:[%s5718_s2 + $0x148] sm:$0xff] }
 0x126   : > { %3079 = vrot.lane.b32.xlu0 %v4742_v22, %s4512_s6  ;;  %1590 = vmatprep.mubr.f32.mxu0 %v4506_v18  ;;  %v2118_v49 = vsel %vm2111_vm4, %v2096_v38, %v5142_v32 }
 0x127   : > { %2184 = vmatprep.subr.mxu0 %v2122_v19  ;;  %3739 = vmatmul.mubr.msk.f32.gmra.mxu0 %vm921_vm0, %v3731_v27 }
 0x128   : > { %1898 = vmatprep.mubr.f32.mxu1 %v4506_v18  ;;  %1596 = vmatprep.mubr.f32.mxu0 %v4506_v18 }
 0x129   : > { %3759 = vmatmul.mubr.msk.f32.gmra.mxu1 %vm921_vm0, %v3751_v39  ;;  %3097 = vrot.lane.b32.xlu1 %v4717_v17, %s4512_s6  ;;  %v2102_v22 = vpop.permute.xlu1 %2101  ;;  %v2092_v40 = vpop.permute.xlu0 %2091 }
 0x12a   : > { %3105 = vrot.lane.b32.xlu0 %v4698_v13, %s4512_s6  ;;  %1904 = vmatprep.mubr.f32.mxu1 %v4506_v18  ;;  %v2120_v42 = vsel %vm2111_vm4, %v2100_v36, %v2102_v22  ;;  %v2116_v48 = vsel %vm2111_vm4, %v2090_v37, %v2092_v40 }
 0x12b   : > { %3740 = vmatmul.mubr.msk.f32.gmra.mxu0 %vm921_vm0, %v3732_v30  ;;  %4052 = vmatprep.subr.mxu1 %v2123_v25 }
 0x12c   : > { %1602 = vmatprep.mubr.f32.mxu0 %v4506_v18  ;;  %4053 = vmatpush3.msra.mxu1 %v2123_v25 }
 0x12d   : > { %3760 = vmatmul.mubr.msk.f32.gmra.mxu1 %vm921_vm0, %v3752_v41  ;;  %3081 = vrot.lane.b32.xlu1 %v4750_v24, %s4512_s6  ;;  %v2082_v13 = vpop.permute.xlu1 %2081  ;;  %v2088_v17 = vpop.permute.xlu0 %2087 }
 0x12e   : > { %3089 = vrot.lane.b32.xlu0 %v4744_v23, %s4512_s6  ;;  %1910 = vmatprep.mubr.f32.mxu1 %v4506_v18  ;;  %v3754_v23 = vld [vmem:[%s5718_s2 + $0xe0] sm:$0xff]  ;;  %v2115_v50 = vsel %vm2111_vm4, %v2088_v17, %v2090_v37  ;;  %v3800_v37 = vld [vmem:[%s5718_s2 + $0x150] sm:$0xff]  ;;  %s4135_s6 = smul.u32 6, %s5798_s23 }
 0x12f   : > { %3741 = vmatmul.mubr.msk.f32.gmra.mxu0 %vm921_vm0, %v3733_v31  ;;  %4054 = vmatprep.subr.mxu1 %v2120_v42  ;;  %v3802_v17 = vld [vmem:[%s5718_s2 + $0x160] sm:$0xff] }
 0x130   : > { %4040 = vmatprep.mubr.msk.f32.mxu0 %vm921_vm0, %v3750_v34  ;;  %4055 = vmatpush3.msra.mxu1 %v2120_v42  ;;  %s767_s22 = sadd.s32 %s4135_s6, %s5800_s11 }
 0x131   : > { %3761 = vmatmul.mubr.msk.f32.gmra.mxu1 %vm921_vm0, %v3753_v43  ;;  %v2094_v24 = vpop.permute.xlu1 %2093  ;;  %s3685_s23 = sshll.u32 %s767_s22, 3 }
 0x132   : > { %1916 = vmatprep.mubr.f32.mxu1 %v4506_v18  ;;  %v2084_v44 = vpop.permute.xlu0 %2083  ;;  %v2117_v45 = vsel %vm2111_vm4, %v2092_v40, %v2094_v24  ;;  %v3801_v40 = vld [vmem:[%s5718_s2 + $0x158] sm:$0xff]  ;;  %s769_s10 = scalar_lea.vmem %s5721_s5, %s3685_s23 }
 0x133   : > { %4041 = vmatmul.mubr.msk.f32.vlgmr.msra.gmra.mxu0 %vm921_vm0, %v3751_v39  ;;  %4056 = vmatprep.subr.mxu1 %v2117_v45  ;;  %v2113_v52 = vsel %vm2111_vm4, %v2082_v13, %v2084_v44 }
 0x134   : > { %2185 = vmatpush1.msra.mxu0 %v2121_v46  ;;  %4043 = vmatprep.mubr.msk.f32.mxu0 %vm921_vm0, %v3752_v41  ;;  %v3803_v46 = vld [vmem:[%s5718_s2 + $0x168] sm:$0xff] }
 0x135   : > { %2186 = vmatprep.subr.mxu0 %v2119_v47  ;;  %3762 = vmatmul.mubr.msk.f32.gmra.mxu1 %vm921_vm0, %v3754_v23 }
 0x136   : > { %2187 = vmatpush1.msra.mxu0 %v2118_v49  ;;  %1922 = vmatprep.mubr.f32.mxu1 %v4506_v18  ;;  %v2086_v53 = vpop.permute.xlu1 %2085  ;;  %v2080_v54 = vpop.permute.xlu0 %2079 }
 0x137   : > { %2188 = vmatprep.subr.mxu0 %v2116_v48  ;;  %4044 = vmatmul.mubr.msk.f32.gmra.mxu0 %vm921_vm0, %v3753_v43  ;;  %v2114_v55 = vsel %vm2111_vm4, %v2084_v44, %v2086_v53  ;;  %v2112_v56 = vsel %vm2111_vm4, %v2080_v54, %v2082_v13  ;;  %v3804_v48 = vld [vmem:[%s5718_s2 + $0x170] sm:$0xff] }
 0x138   : > { %4046 = vmatprep.mubr.msk.f32.mxu0 %vm921_vm0, %v3754_v23  ;;  %2189 = vmatpush1.msra.mxu0 %v2115_v50 }
 0x139   : > { %3763 = vmatmul.mubr.msk.f32.gmra.mxu1 %vm921_vm0, %v3755_v51  ;;  %2190 = vmatprep.subr.mxu0 %v2113_v52  ;;  %v3805_v52 = vld [vmem:[%s5718_s2 + $0x178] sm:$0xff] }
 0x13a   : > { %1928 = vmatprep.mubr.f32.mxu1 %v4506_v18  ;;  %4057 = vmatpush3.msra.mxu1 %v2117_v45  ;;  %v5234_v58 = vpop.permute.xlu1 %2439  ;;  %v2438_v59 = vpop.permute.xlu0 %2437 }
 0x13b   : > { %4047 = vmatmul.mubr.msk.f32.gmra.mxu0 %vm921_vm0, %v3755_v51  ;;  %4058 = vmatprep.subr.mxu1 %v2114_v55  ;;  %v2454_v61 = vsel %vm2443_vm5, %v2438_v59, %v5234_v58 }
 0x13c   : > { %4049 = vmatprep.mubr.msk.f32.mxu0 %vm921_vm0, %v3756_v57  ;;  %2191 = vmatpush1.msra.mxu0 %v2112_v56 }
 0x13d   : > { %3764 = vmatmul.mubr.msk.f32.gmra.mxu1 %vm921_vm0, %v3756_v57  ;;  %v3822_v57 = vld [vmem:[%s5718_s2 + $0x180] sm:$0xff] }
 0x13e   : > { %1934 = vmatprep.mubr.f32.mxu1 %v4506_v18  ;;  %4059 = vmatpush3.msra.mxu1 %v2114_v55  ;;  %v2430_v62 = vpop.permute.xlu1 %2429  ;;  %v2436_v63 = vpop.permute.xlu0 %2435 }
 0x13f   : > { %4050 = vmatmul.mubr.msk.f32.gmra.mxu0 %vm921_vm0, %v3757_v60  ;;  %2516 = vmatprep.subr.mxu1 %v2454_v61  ;;  %v2453_v8 = vsel %vm2443_vm5, %v2436_v63, %v2438_v59 }
 0x140   : > { %2224 = vmatprep.mubr.f32.mxu0 %v4506_v18 }
 0x141   : > { %3765 = vmatmul.mubr.msk.f32.gmra.mxu1 %vm921_vm0, %v3757_v60 }
 0x142   : > { %4060 = vmatprep.mubr.msk.f32.mxu1 %vm921_vm0, %v3774_v0  ;;  %v2428_v2 = vpop.permute.xlu1 %2427  ;;  %v2432_v10 = vpop.permute.xlu0 %2431 }
 0x143   : > { %3782 = vmatmul.mubr.msk.f32.vlgmr.msra.gmra.mxu0 %vm921_vm0, %v3774_v0  ;;  %v2451_v4 = vsel %vm2443_vm5, %v2430_v62, %v2432_v10  ;;  %v2450_v5 = vsel %vm2443_vm5, %v2428_v2, %v2430_v62 }
 0x144   : > { %2230 = vmatprep.mubr.f32.mxu0 %v4506_v18 }
 0x145   : > { %4061 = vmatmul.mubr.msk.f32.vlgmr.msra.gmra.mxu1 %vm921_vm0, %v3775_v1 }
 0x146   : > { %4063 = vmatprep.mubr.msk.f32.mxu1 %vm921_vm0, %v3776_v3  ;;  %2517 = vmatpush1.msra.mxu1 %v2453_v8  ;;  %v2424_v6 = vpop.permute.xlu1 %2423  ;;  %v2422_v7 = vpop.permute.xlu0 %2421 }
 0x147   : > { %3783 = vmatmul.mubr.msk.f32.gmra.mxu0 %vm921_vm0, %v3775_v1  ;;  %2518 = vmatprep.subr.mxu1 %v2451_v4  ;;  %v2448_v9 = vsel %vm2443_vm5, %v2422_v7, %v2424_v6  ;;  %v3824_v4 = vld [vmem:[%s5718_s2 + $0x190] sm:$0xff] }
 0x148   : > { %2236 = vmatprep.mubr.f32.mxu0 %v4506_v18  ;;  %2519 = vmatpush1.msra.mxu1 %v2450_v5 }
 0x149   : > { %4064 = vmatmul.mubr.msk.f32.gmra.mxu1 %vm921_vm0, %v3777_v11  ;;  %2520 = vmatprep.subr.mxu1 %v2448_v9  ;;  %v3826_v9 = vld [vmem:[%s5718_s2 + $0x1a0] sm:$0xff] }
 0x14a   : > { %4066 = vmatprep.mubr.msk.f32.mxu1 %vm921_vm0, %v3778_v21  ;;  %v2414_v27 = vpop.permute.xlu1 %2413  ;;  %v2420_v28 = vpop.permute.xlu0 %2419 }
 0x14b   : > { %3784 = vmatmul.mubr.msk.f32.gmra.mxu0 %vm921_vm0, %v3776_v3  ;;  %v2447_v14 = vsel %vm2443_vm5, %v2420_v28, %v2422_v7  ;;  %v3823_v3 = vld [vmem:[%s5718_s2 + $0x188] sm:$0xff]  ;;  %v3825_v7 = vld [vmem:[%s5718_s2 + $0x198] sm:$0xff] }
 0x14c   : > { %2242 = vmatprep.mubr.f32.mxu0 %v4506_v18  ;;  %2521 = vmatpush1.msra.mxu1 %v2447_v14  ;;  %v3827_v14 = vld [vmem:[%s5718_s2 + $0x1a8] sm:$0xff] }
 0x14d   : > { %4067 = vmatmul.mubr.msk.f32.gmra.mxu1 %vm921_vm0, %v3779_v26 }
 0x14e   : > { %4069 = vmatprep.mubr.msk.f32.mxu1 %vm921_vm0, %v3780_v29  ;;  %v2412_v30 = vpop.permute.xlu1 %2411 }
 0x14f   : > { %3785 = vmatmul.mubr.msk.f32.gmra.mxu0 %vm921_vm0, %v3777_v11  ;;  %v2444_v31 = vsel %vm2443_vm5, %v2412_v30, %v2414_v27  ;;  %v2416_v32 = vpop.permute.xlu0 %2415  ;;  %v3419_v11 = vld [vmem:[%s5719_s3] sm:$0xff]  ;;  %v3828_v30 = vld [vmem:[%s5718_s2 + $0x1b0] sm:$0xff] }
 0x150   : > { %2248 = vmatprep.mubr.f32.mxu0 %v4506_v18  ;;  %v2445_v33 = vsel %vm2443_vm5, %v2414_v27, %v2416_v32  ;;  %v3428_v27 = vld [vmem:[%s5720_s4] sm:$0xff] }
 0x151   : > { %4070 = vmatmul.mubr.msk.f32.gmra.mxu1 %vm921_vm0, %v3781_v12  ;;  %2522 = vmatprep.subr.mxu1 %v2445_v33  ;;  %v3829_v33 = vld [vmem:[%s5718_s2 + $0x1b8] sm:$0xff] }
 0x152   : > { %2523 = vmatpush1.msra.mxu1 %v2444_v31  ;;  %2556 = vmatprep.mubr.f32.mxu1 %v4506_v18 }
 0x153   : > { %3786 = vmatmul.mubr.msk.f32.gmra.mxu0 %vm921_vm0, %v3778_v21 }
 0x154   : > { %2254 = vmatprep.mubr.f32.mxu0 %v4506_v18 }
 0x155   : > { %v2434_v15 = vpop.permute.xlu1 %2433  ;;  %3806 = vmatmul.mubr.msk.f32.vlgmr.msra.gmra.mxu1 %vm921_vm0, %v3798_v16 }
 0x156   : > { %v2442_v34 = vpop.permute.xlu0 %2441  ;;  %2562 = vmatprep.mubr.f32.mxu1 %v4506_v18  ;;  %v2452_v20 = vsel %vm2443_vm5, %v2432_v10, %v2434_v15 }
 0x157   : > { %3787 = vmatmul.mubr.msk.f32.gmra.mxu0 %vm921_vm0, %v3779_v26  ;;  %v2455_v36 = vsel %vm2443_vm5, %v5234_v58, %v2442_v34  ;;  %v4513_v26 = vmov 0  }
 0x158   : > { %2260 = vmatprep.mubr.f32.mxu0 %v4506_v18  ;;  %4072 = vmatprep.subr.mxu0 %v2455_v36 }
 0x159   : > { %4073 = vmatpush3.msra.mxu0 %v2455_v36  ;;  %3807 = vmatmul.mubr.msk.f32.gmra.mxu1 %vm921_vm0, %v3799_v35 }
 0x15a   : > { %v2418_v19 = vpop.permute.xlu1 %2417  ;;  %4074 = vmatprep.subr.mxu0 %v2452_v20  ;;  %2568 = vmatprep.mubr.f32.mxu1 %v4506_v18 }
 0x15b   : > { %3788 = vmatmul.mubr.msk.f32.gmra.mxu0 %vm921_vm0, %v3780_v29  ;;  %v2426_v38 = vpop.permute.xlu0 %2425  ;;  %v2446_v22 = vsel %vm2443_vm5, %v2416_v32, %v2418_v19  ;;  %4347 = vset.pattern.permute.xlu0 %v4513_v26 }
 0x15c   : > { %2266 = vmatprep.mubr.f32.mxu0 %v4506_v18  ;;  %4075 = vmatpush3.msra.mxu0 %v2452_v20  ;;  %v2449_v39 = vsel %vm2443_vm5, %v2424_v6, %v2426_v38 }
 0x15d   : > { %4076 = vmatprep.subr.mxu0 %v2449_v39  ;;  %3808 = vmatmul.mubr.msk.f32.gmra.mxu1 %vm921_vm0, %v3800_v37 }
 0x15e   : > { %4077 = vmatpush3.msra.mxu0 %v2449_v39  ;;  %v2772_v25 = vpop.permute.xlu1 %2771  ;;  %2574 = vmatprep.mubr.f32.mxu1 %v4506_v18 }
 0x15f   : > { %3789 = vmatmul.mubr.msk.f32.gmra.mxu0 %vm921_vm0, %v3781_v12  ;;  %4078 = vmatprep.subr.mxu0 %v2446_v22  ;;  %v2770_v41 = vpop.permute.xlu0 %2769 }
 0x160   : > { %4079 = vmatpush3.msra.mxu0 %v2446_v22  ;;  %4080 = vmatprep.mubr.msk.f32.mxu0 %vm921_vm0, %v3798_v16  ;;  %v2786_v42 = vsel %vm2775_vm6, %v2770_v41, %v2772_v25 }
 0x161   : > { %2848 = vmatprep.subr.mxu0 %v2786_v42  ;;  %3809 = vmatmul.mubr.msk.f32.gmra.mxu1 %vm921_vm0, %v3801_v40 }
 0x162   : > { %v2762_v13 = vpop.permute.xlu1 %2761  ;;  %2580 = vmatprep.mubr.f32.mxu1 %v4506_v18  ;;  %4348 = vset.pattern.permute.xlu1 %v4513_v26 }
 0x163   : > { %4081 = vmatmul.mubr.msk.f32.vlgmr.msra.gmra.mxu0 %vm921_vm0, %v3799_v35  ;;  %v2768_v43 = vpop.permute.xlu0 %2767  ;;  %3422 = vperm.xlu0 %4347, %v3419_v11  }
 0x164   : > { %v2785_v24 = vsel %vm2775_vm6, %v2768_v43, %v2770_v41  ;;  %4083 = vmatprep.mubr.msk.f32.mxu0 %vm921_vm0, %v3800_v37  ;;  %3431 = vperm.xlu1 %4348, %v3428_v27  }
 0x165   : > { %2849 = vmatpush1.msra.mxu0 %v2785_v24  ;;  %3810 = vmatmul.mubr.msk.f32.gmra.mxu1 %vm921_vm0, %v3802_v17 }
 0x166   : > { %v2774_v23 = vpop.permute.xlu1 %2773  ;;  %2586 = vmatprep.mubr.f32.mxu1 %v4506_v18 }
 0x167   : > { %4084 = vmatmul.mubr.msk.f32.gmra.mxu0 %vm921_vm0, %v3801_v40  ;;  %v2764_v44 = vpop.permute.xlu0 %2763  ;;  %v2787_v45 = vsel %vm2775_vm6, %v2772_v25, %v2774_v23  ;;  %v3846_v40 = vld [vmem:[%s5718_s2 + $0x1c0] sm:$0xff] }
 0x168   : > { %4086 = vmatprep.mubr.msk.f32.mxu0 %vm921_vm0, %v3802_v17  ;;  %v2783_v47 = vsel %vm2775_vm6, %v2762_v13, %v2764_v44  ;;  %4092 = vmatprep.subr.mxu1 %v2787_v45 }
 0x169   : > { %2850 = vmatprep.subr.mxu0 %v2783_v47  ;;  %4093 = vmatpush3.msra.mxu1 %v2787_v45 }
 0x16a   : > { %v2754_v49 = vpop.permute.xlu1 %2753  ;;  %3811 = vmatmul.mubr.msk.f32.gmra.mxu1 %vm921_vm0, %v3803_v46 }
 0x16b   : > { %4087 = vmatmul.mubr.msk.f32.gmra.mxu0 %vm921_vm0, %v3803_v46  ;;  %v2760_v50 = vpop.permute.xlu0 %2759  ;;  %2592 = vmatprep.mubr.f32.mxu1 %v4506_v18 }
 0x16c   : > { %v2782_v51 = vsel %vm2775_vm6, %v2760_v50, %v2762_v13  ;;  %4089 = vmatprep.mubr.msk.f32.mxu0 %vm921_vm0, %v3804_v48 }
 0x16d   : > { %2851 = vmatpush1.msra.mxu0 %v2782_v51  ;;  %v3848_v51 = vld [vmem:[%s5718_s2 + $0x1d0] sm:$0xff] }
 0x16e   : > { %v2766_v53 = vpop.permute.xlu1 %2765  ;;  %3812 = vmatmul.mubr.msk.f32.gmra.mxu1 %vm921_vm0, %v3804_v48 }
 0x16f   : > { %4090 = vmatmul.mubr.msk.f32.gmra.mxu0 %vm921_vm0, %v3805_v52  ;;  %v2756_v54 = vpop.permute.xlu0 %2755  ;;  %v2784_v55 = vsel %vm2775_vm6, %v2764_v44, %v2766_v53  ;;  %2598 = vmatprep.mubr.f32.mxu1 %v4506_v18  ;;  %v3847_v44 = vld [vmem:[%s5718_s2 + $0x1c8] sm:$0xff] }
 0x170   : > { %v2780_v56 = vsel %vm2775_vm6, %v2754_v49, %v2756_v54  ;;  %4094 = vmatprep.subr.mxu1 %v2784_v55  ;;  %2888 = vmatprep.mubr.f32.mxu0 %v4506_v18 }
 0x171   : > { %2852 = vmatprep.subr.mxu0 %v2780_v56  ;;  %4095 = vmatpush3.msra.mxu1 %v2784_v55  ;;  %v3849_v55 = vld [vmem:[%s5718_s2 + $0x1d8] sm:$0xff] }
 0x172   : > { %v2746_v58 = vpop.permute.xlu1 %2745  ;;  %3813 = vmatmul.mubr.msk.f32.gmra.mxu1 %vm921_vm0, %v3805_v52 }
 0x173   : > { %4100 = vmatprep.mubr.msk.f32.mxu1 %vm921_vm0, %v3822_v57 }
 0x174   : > { %v2752_v59 = vpop.permute.xlu0 %2751 }
 0x175   : > { %v2779_v60 = vsel %vm2775_vm6, %v2752_v59, %v2754_v49 }
 0x176   : > { %2853 = vmatpush1.msra.mxu0 %v2779_v60 }
 0x178   : > { %v2758_v61 = vpop.permute.xlu1 %2757 }
 0x179   : > { %v2748_v62 = vpop.permute.xlu0 %2747  ;;  %v2781_v63 = vsel %vm2775_vm6, %v2756_v54, %v2758_v61  ;;  %v3851_v61 = vld [vmem:[%s5718_s2 + $0x1e8] sm:$0xff] }
 0x17a   : > { %v2777_v0 = vsel %vm2775_vm6, %v2746_v58, %v2748_v62  ;;  %4096 = vmatprep.subr.mxu1 %v2781_v63 }
 0x17b   : > { %2854 = vmatprep.subr.mxu0 %v2777_v0  ;;  %4097 = vmatpush3.msra.mxu1 %v2781_v63  ;;  %v3852_v0 = vld [vmem:[%s5718_s2 + $0x1f0] sm:$0xff] }
 0x17c   : > { %v2750_v1 = vpop.permute.xlu1 %2749 }
 0x17d   : > { %v2744_v2 = vpop.permute.xlu0 %2743  ;;  %v2778_v10 = vsel %vm2775_vm6, %v2748_v62, %v2750_v1 }
 0x17e   : > { %v2776_v8 = vsel %vm2775_vm6, %v2744_v2, %v2746_v58  ;;  %4098 = vmatprep.subr.mxu1 %v2778_v10  ;;  %v3850_v58 = vld [vmem:[%s5718_s2 + $0x1e0] sm:$0xff] }
 0x17f   : > { %2855 = vmatpush1.msra.mxu0 %v2776_v8  ;;  %4099 = vmatpush3.msra.mxu1 %v2778_v10  ;;  %v3853_v10 = vld [vmem:[%s5718_s2 + $0x1f8] sm:$0xff] }
 0x180   : > { %3830 = vmatmul.mubr.msk.f32.vlgmr.msra.gmra.mxu0 %vm921_vm0, %v3822_v57  ;;  %v5379_v5 = vpop.permute.xlu1 %3103  ;;  %4101 = vmatmul.mubr.msk.f32.vlgmr.msra.gmra.mxu1 %vm921_vm0, %v3823_v3 }
 0x181   : > { %v3102_v6 = vpop.permute.xlu0 %3101  ;;  %2894 = vmatprep.mubr.f32.mxu0 %v4506_v18  ;;  %4103 = vmatprep.mubr.msk.f32.mxu1 %vm921_vm0, %v3824_v4 }
 0x182   : > { %v3118_v21 = vsel %vm3107_vm7, %v3102_v6, %v5379_v5 }
 0x183   : > { %3180 = vmatprep.subr.mxu1 %v3118_v21 }
 0x184   : > { %3831 = vmatmul.mubr.msk.f32.gmra.mxu0 %vm921_vm0, %v3823_v3  ;;  %v3094_v28 = vpop.permute.xlu1 %3093  ;;  %4104 = vmatmul.mubr.msk.f32.gmra.mxu1 %vm921_vm0, %v3825_v7 }
 0x185   : > { %v3100_v29 = vpop.permute.xlu0 %3099  ;;  %2900 = vmatprep.mubr.f32.mxu0 %v4506_v18  ;;  %4106 = vmatprep.mubr.msk.f32.mxu1 %vm921_vm0, %v3826_v9 }
 0x186   : > { %v3117_v12 = vsel %vm3107_vm7, %v3100_v29, %v3102_v6 }
 0x187   : > { %3181 = vmatpush1.msra.mxu1 %v3117_v12 }
 0x188   : > { %3832 = vmatmul.mubr.msk.f32.gmra.mxu0 %vm921_vm0, %v3824_v4  ;;  %4107 = vmatmul.mubr.msk.f32.gmra.mxu1 %vm921_vm0, %v3827_v14 }
 0x189   : > { %v3092_v31 = vpop.permute.xlu1 %3091  ;;  %2906 = vmatprep.mubr.f32.mxu0 %v4506_v18  ;;  %4109 = vmatprep.mubr.msk.f32.mxu1 %vm921_vm0, %v3828_v30 }
 0x18a   : > { %v3096_v32 = vpop.permute.xlu0 %3095  ;;  %v3114_v16 = vsel %vm3107_vm7, %v3092_v31, %v3094_v28 }
 0x18b   : > { %v3115_v15 = vsel %vm3107_vm7, %v3094_v28, %v3096_v32 }
 0x18c   : > { %3182 = vmatprep.subr.mxu1 %v3115_v15  ;;  %3833 = vmatmul.mubr.msk.f32.gmra.mxu0 %vm921_vm0, %v3825_v7 }
 0x18d   : > { %v3088_v34 = vpop.permute.xlu1 %3087  ;;  %4110 = vmatmul.mubr.msk.f32.gmra.mxu1 %vm921_vm0, %v3829_v33  ;;  %2912 = vmatprep.mubr.f32.mxu0 %v4506_v18 }
 0x18e   : > { %v3086_v35 = vpop.permute.xlu0 %3085  ;;  %3183 = vmatpush1.msra.mxu1 %v3114_v16  ;;  %3220 = vmatprep.mubr.f32.mxu1 %v4506_v18 }
 0x18f   : > { %v3112_v36 = vsel %vm3107_vm7, %v3086_v35, %v3088_v34 }
 0x190   : > { %3184 = vmatprep.subr.mxu1 %v3112_v36  ;;  %3834 = vmatmul.mubr.msk.f32.gmra.mxu0 %vm921_vm0, %v3826_v9 }
 0x191   : > { %2918 = vmatprep.mubr.f32.mxu0 %v4506_v18 }
 0x192   : > { %v3078_v20 = vpop.permute.xlu1 %3077 }
 0x193   : > { %v3084_v19 = vpop.permute.xlu0 %3083 }
 0x194   : > { %v3111_v37 = vsel %vm3107_vm7, %v3084_v19, %v3086_v35  ;;  %3835 = vmatmul.mubr.msk.f32.gmra.mxu0 %vm921_vm0, %v3827_v14 }
 0x195   : > { %3185 = vmatpush1.msra.mxu1 %v3111_v37  ;;  %2924 = vmatprep.mubr.f32.mxu0 %v4506_v18 }
 0x197   : > { %v3076_v38 = vpop.permute.xlu1 %3075 }
 0x198   : > { %v3108_v39 = vsel %vm3107_vm7, %v3076_v38, %v3078_v20  ;;  %v3080_v25 = vpop.permute.xlu0 %3079  ;;  %3836 = vmatmul.mubr.msk.f32.gmra.mxu0 %vm921_vm0, %v3828_v30 }
 0x199   : > { %v3109_v22 = vsel %vm3107_vm7, %v3078_v20, %v3080_v25  ;;  %2930 = vmatprep.mubr.f32.mxu0 %v4506_v18  ;;  %v5435_v41 = vpop.f32.mrf.mxu0 }
 0x19a   : > { %3186 = vmatprep.subr.mxu1 %v3109_v22  ;;  %v5437_v42 = vpop.f32.mrf.mxu1 }
 0x19b   : > { %3187 = vmatpush1.msra.mxu1 %v3108_v39  ;;  %v3098_v13 = vpop.permute.xlu1 %3097  ;;  %v1014_v17 = vpop.f32.mrf.mxu0 }
 0x19c   : > { %v3106_v43 = vpop.permute.xlu0 %3105  ;;  %3854 = vmatmul.mubr.msk.f32.vlgmr.msra.gmra.mxu1 %vm921_vm0, %v3846_v40  ;;  %3837 = vmatmul.mubr.msk.f32.gmra.mxu0 %vm921_vm0, %v3829_v33  ;;  %v5441_v24 = vpop.f32.mrf.mxu1  ;;  %v3116_v46 = vsel %vm3107_vm7, %v3096_v32, %v3098_v13 }
 0x19d   : > { %v3119_v23 = vsel %vm3107_vm7, %v5379_v5, %v3106_v43  ;;  %3226 = vmatprep.mubr.f32.mxu1 %v4506_v18  ;;  %4120 = vmatprep.mubr.msk.f32.mxu0 %vm921_vm0, %v3846_v40 }
 0x19e   : > { %4112 = vmatprep.subr.mxu0 %v3119_v23 }
 0x19f   : > { %4113 = vmatpush3.msra.mxu0 %v3119_v23  ;;  %v3082_v45 = vpop.permute.xlu1 %3081  ;;  %v1018_v47 = vpop.f32.mrf.mxu0 }
 0x1a0   : > { %4114 = vmatprep.subr.mxu0 %v3116_v46  ;;  %v3090_v48 = vpop.permute.xlu0 %3089  ;;  %3855 = vmatmul.mubr.msk.f32.gmra.mxu1 %vm921_vm0, %v3847_v44  ;;  %v5452_v49 = vpop.f32.mrf.mxu1  ;;  %v3110_v53 = vsel %vm3107_vm7, %v3080_v25, %v3082_v45 }
 0x1a1   : > { %4115 = vmatpush3.msra.mxu0 %v3116_v46  ;;  %v3113_v50 = vsel %vm3107_vm7, %v3088_v34, %v3090_v48  ;;  %3232 = vmatprep.mubr.f32.mxu1 %v4506_v18  ;;  %v1020_v52 = vpop.f32.mrf.mxu0 }
 0x1a2   : > { %4116 = vmatprep.subr.mxu0 %v3113_v50  ;;  %v5460_v54 = vpop.f32.mrf.mxu1 }
 0x1a3   : > { %4117 = vmatpush3.msra.mxu0 %v3113_v50 }
 0x1a4   : > { %3856 = vmatmul.mubr.msk.f32.gmra.mxu1 %vm921_vm0, %v3848_v51  ;;  %4118 = vmatprep.subr.mxu0 %v3110_v53 }
 0x1a5   : > { %4119 = vmatpush3.msra.mxu0 %v3110_v53  ;;  %3238 = vmatprep.mubr.f32.mxu1 %v4506_v18 }
 0x1a6   : > { %4121 = vmatmul.mubr.msk.f32.vlgmr.msra.gmra.mxu0 %vm921_vm0, %v3847_v44  ;;  %v1024_v56 = vpop.f32.mrf.mxu0 }
 0x1a7   : > { %4123 = vmatprep.mubr.msk.f32.mxu0 %vm921_vm0, %v3848_v51  ;;  %v5469_v57 = vpop.f32.mrf.mxu1 }
 0x1a8   : > { %3857 = vmatmul.mubr.msk.f32.gmra.mxu1 %vm921_vm0, %v3849_v55  ;;  %v1026_v59 = vpop.f32.mrf.mxu0 }
 0x1a9   : > { %3244 = vmatprep.mubr.f32.mxu1 %v4506_v18  ;;  %v5476_v60 = vpop.f32.mrf.mxu1 }
 0x1aa   : > { %4124 = vmatmul.mubr.msk.f32.gmra.mxu0 %vm921_vm0, %v3849_v55 }
 0x1ab   : > { %4126 = vmatprep.mubr.msk.f32.mxu0 %vm921_vm0, %v3850_v58  ;;  %v1030_v62 = vpop.f32.mrf.mxu0 }
 0x1ac   : > { %3858 = vmatmul.mubr.msk.f32.gmra.mxu1 %vm921_vm0, %v3850_v58  ;;  %v5484_v63 = vpop.f32.mrf.mxu1 }
 0x1ad   : > { %3250 = vmatprep.mubr.f32.mxu1 %v4506_v18  ;;  %v1032_v1 = vpop.f32.mrf.mxu0 }
 0x1ae   : > { %4127 = vmatmul.mubr.msk.f32.gmra.mxu0 %vm921_vm0, %v3851_v61  ;;  %v5491_v2 = vpop.f32.mrf.mxu1 }
 0x1af   : > { %4129 = vmatprep.mubr.msk.f32.mxu0 %vm921_vm0, %v3852_v0  ;;  %v1036_v3 = vpop.f32.mrf.mxu0 }
 0x1b0   : > { %3859 = vmatmul.mubr.msk.f32.gmra.mxu1 %vm921_vm0, %v3851_v61  ;;  %v1254_v8 = vpop.f32.mrf.mxu1 }
 0x1b1   : > { %3256 = vmatprep.mubr.f32.mxu1 %v4506_v18  ;;  %v1255_v4 = vadd.f32 %v1254_v8, %v5435_v41  ;;  %v1038_v5 = vpop.f32.mrf.mxu0 }
 0x1b2   : > { %4130 = vmatmul.mubr.msk.f32.gmra.mxu0 %vm921_vm0, %v3853_v10  ;;  %v1256_v11 = vpop.f32.mrf.mxu1 }
 0x1b3   : > { %v1257_v6 = vadd.f32 %v1256_v11, %v1014_v17  ;;  %v1042_v7 = vpop.f32.mrf.mxu0 }
 0x1b4   : > { %3860 = vmatmul.mubr.msk.f32.gmra.mxu1 %vm921_vm0, %v3852_v0 }
 0x1b5   : > { %3262 = vmatprep.mubr.f32.mxu1 %v4506_v18  ;;  %v1260_v21 = vpop.f32.mrf.mxu1  ;;  %v1044_v9 = vpop.f32.mrf.mxu0 }
 0x1b6   : > { %v1261_v26 = vadd.f32 %v1260_v21, %v1018_v47 }
 0x1b7   : > { %v1262_v27 = vpop.f32.mrf.mxu1  ;;  %v1048_v28 = vpop.f32.mrf.mxu0 }
 0x1b8   : > { %3861 = vmatmul.mubr.msk.f32.gmra.mxu1 %vm921_vm0, %v3853_v10  ;;  %v1263_v29 = vadd.f32 %v1262_v27, %v1020_v52 }
 0x1b9   : > { %v1266_v14 = vpop.f32.mrf.mxu1  ;;  %v1050_v12 = vpop.f32.mrf.mxu0 }
 0x1ba   : > { %v1267_v30 = vadd.f32 %v1266_v14, %v1024_v56 }
 0x1bb   : > { %v1268_v31 = vpop.f32.mrf.mxu1  ;;  %v1054_v32 = vpop.f32.mrf.mxu0 }
 0x1bc   : > { %v1269_v33 = vadd.f32 %v1268_v31, %v1026_v59 }
 0x1bd   : > { %v1272_v16 = vpop.f32.mrf.mxu1  ;;  %v1056_v15 = vpop.f32.mrf.mxu0 }
 0x1be   : > { %v1273_v34 = vadd.f32 %v1272_v16, %v1030_v62 }
 0x1bf   : > { %v1274_v35 = vpop.f32.mrf.mxu1  ;;  %v4002_v36 = vpop.f32.mrf.mxu0 }
 0x1c0   : > { %v1275_v18 = vadd.f32 %v1274_v35, %v1032_v1  ;;  %v1373_v20 = vadd.f32 %v4002_v36, %v5437_v42 }
 0x1c1   : > { %v1278_v19 = vpop.f32.mrf.mxu1  ;;  %v1367_v37 = vpop.f32.mrf.mxu0 }
 0x1c2   : > { %v1279_v38 = vadd.f32 %v1278_v19, %v1036_v3  ;;  %v1368_v39 = vadd.f32 %v1367_v37, %v5441_v24 }
 0x1c3   : > { %v1280_v25 = vpop.f32.mrf.mxu1 }
 0x1c4   : > { %v1281_v22 = vadd.f32 %v1280_v25, %v1038_v5  ;;  %v4005_v40 = vpop.f32.mrf.mxu0 }
 0x1c5   : > { %v1383_v41 = vadd.f32 %v4005_v40, %v5452_v49  ;;  %v1284_v13 = vpop.f32.mrf.mxu1 }
 0x1c6   : > { %v1285_v17 = vadd.f32 %v1284_v13, %v1042_v7  ;;  %v1377_v43 = vpop.f32.mrf.mxu0 }
 0x1c7   : > { %v1378_v23 = vadd.f32 %v1377_v43, %v5460_v54  ;;  %v1286_v44 = vpop.f32.mrf.mxu1 }
 0x1c8   : > { %v1287_v45 = vadd.f32 %v1286_v44, %v1044_v9 }
 0x1c9   : > { %v4008_v46 = vpop.f32.mrf.mxu0  ;;  %v1290_v47 = vpop.f32.mrf.mxu1 }
 0x1ca   : > { %v1393_v42 = vadd.f32 %v4008_v46, %v5469_v57  ;;  %v1291_v48 = vadd.f32 %v1290_v47, %v1048_v28 }
 0x1cb   : > { %v1387_v50 = vpop.f32.mrf.mxu0  ;;  %v1292_v51 = vpop.f32.mrf.mxu1 }
 0x1cc   : > { %v1388_v24 = vadd.f32 %v1387_v50, %v5476_v60  ;;  %v1293_v52 = vadd.f32 %v1292_v51, %v1050_v12 }
 0x1cd   : > { %v4011_v53 = vpop.f32.mrf.mxu0  ;;  %v1296_v55 = vpop.f32.mrf.mxu1 }
 0x1ce   : > { %v1403_v49 = vadd.f32 %v4011_v53, %v5484_v63  ;;  %v1297_v56 = vadd.f32 %v1296_v55, %v1054_v32 }
 0x1cf   : > { %v1397_v58 = vpop.f32.mrf.mxu0  ;;  %v1298_v59 = vpop.f32.mrf.mxu1 }
 0x1d0   : > { %v1398_v54 = vadd.f32 %v1397_v58, %v5491_v2  ;;  %v1299_v61 = vadd.f32 %v1298_v59, %v1056_v15 }
 0x1d1   : > { %v1562_v62 = vpop.f32.mrf.mxu0  ;;  %v4022_v0 = vpop.f32.mrf.mxu1 }
 0x1d2   : > { %v1714_v1 = vadd.f32 %v1562_v62, %v1255_v4  ;;  %v1719_v57 = vadd.f32 %v4022_v0, %v1373_v20 }
 0x1d3   : > { %v1564_v10 = vpop.f32.mrf.mxu0  ;;  %v1675_v3 = vpop.f32.mrf.mxu1 }
 0x1d4   : > { %v1715_v8 = vadd.f32 %v1564_v10, %v1257_v6  ;;  %v1716_v5 = vadd.f32 %v1675_v3, %v1368_v39 }
 0x1d5   : > { %v1568_v60 = vpop.f32.mrf.mxu0 }
 0x1d6   : > { %v1717_v11 = vadd.f32 %v1568_v60, %v1261_v26  ;;  %v4025_v7 = vpop.f32.mrf.mxu1 }
 0x1d7   : > { %v1725_v21 = vadd.f32 %v4025_v7, %v1383_v41  ;;  %v1570_v9 = vpop.f32.mrf.mxu0 }
 0x1d8   : > { %v1718_v63 = vadd.f32 %v1570_v9, %v1263_v29  ;;  %v1685_v27 = vpop.f32.mrf.mxu1 }
 0x1d9   : > { %v1722_v28 = vadd.f32 %v1685_v27, %v1378_v23  ;;  %v1574_v14 = vpop.f32.mrf.mxu0 }
 0x1da   : > { %v1720_v12 = vadd.f32 %v1574_v14, %v1267_v30 }
 0x1db   : > { %v4028_v2 = vpop.f32.mrf.mxu1  ;;  %v1576_v31 = vpop.f32.mrf.mxu0 }
 0x1dc   : > { %v1731_v32 = vadd.f32 %v4028_v2, %v1393_v42  ;;  %v1721_v16 = vadd.f32 %v1576_v31, %v1269_v33 }
 0x1dd   : > { %v1695_v4 = vpop.f32.mrf.mxu1  ;;  %v1580_v15 = vpop.f32.mrf.mxu0 }
 0x1de   : > { %v1728_v35 = vadd.f32 %v1695_v4, %v1388_v24  ;;  %v1723_v36 = vadd.f32 %v1580_v15, %v1273_v34 }
 0x1df   : > { %v4031_v6 = vpop.f32.mrf.mxu1  ;;  %v1582_v20 = vpop.f32.mrf.mxu0 }
 0x1e0   : > { %v1737_v19 = vadd.f32 %v4031_v6, %v1403_v49  ;;  %v1724_v26 = vadd.f32 %v1582_v20, %v1275_v18 }
 0x1e1   : > { %v1705_v37 = vpop.f32.mrf.mxu1 }
 0x1e2   : > { %v1734_v39 = vadd.f32 %v1705_v37, %v1398_v54  ;;  %v1586_v25 = vpop.f32.mrf.mxu0 }
 0x1e3   : > { %v1726_v29 = vadd.f32 %v1586_v25, %v1279_v38 }
 0x1e4   : > { %v1894_v40 = vpop.f32.mrf.mxu1  ;;  %v1588_v41 = vpop.f32.mrf.mxu0 }
 0x1e5   : > { %v2046_v13 = vadd.f32 %v1894_v40, %v1714_v1  ;;  %v1727_v30 = vadd.f32 %v1588_v41, %v1281_v22 }
 0x1e6   : > { %v1896_v43 = vpop.f32.mrf.mxu1 }
 0x1e7   : > { %v2047_v23 = vadd.f32 %v1896_v43, %v1715_v8  ;;  %v1592_v44 = vpop.f32.mrf.mxu0 }
 0x1e8   : > { %v1729_v33 = vadd.f32 %v1592_v44, %v1285_v17 }
 0x1e9   : > { %v1900_v46 = vpop.f32.mrf.mxu1  ;;  %v1594_v47 = vpop.f32.mrf.mxu0 }
 0x1ea   : > { %v2049_v42 = vadd.f32 %v1900_v46, %v1717_v11  ;;  %v1730_v34 = vadd.f32 %v1594_v47, %v1287_v45 }
 0x1eb   : > { %v1902_v50 = vpop.f32.mrf.mxu1  ;;  %v1598_v51 = vpop.f32.mrf.mxu0 }
 0x1ec   : > { %v2050_v24 = vadd.f32 %v1902_v50, %v1718_v63  ;;  %v1732_v18 = vadd.f32 %v1598_v51, %v1291_v48 }
 0x1ed   : > { %v1906_v53 = vpop.f32.mrf.mxu1  ;;  %v1600_v55 = vpop.f32.mrf.mxu0 }
 0x1ee   : > { %v2052_v49 = vadd.f32 %v1906_v53, %v1720_v12  ;;  %v1733_v38 = vadd.f32 %v1600_v55, %v1293_v52 }
 0x1ef   : > { %v1908_v58 = vpop.f32.mrf.mxu1  ;;  %v1604_v59 = vpop.f32.mrf.mxu0 }
 0x1f0   : > { %v2053_v54 = vadd.f32 %v1908_v58, %v1721_v16  ;;  %v1735_v22 = vadd.f32 %v1604_v59, %v1297_v56 }
 0x1f1   : > { %v1912_v62 = vpop.f32.mrf.mxu1  ;;  %v1606_v0 = vpop.f32.mrf.mxu0 }
 0x1f2   : > { %v2055_v1 = vadd.f32 %v1912_v62, %v1723_v36  ;;  %v1736_v17 = vadd.f32 %v1606_v0, %v1299_v61 }
 0x1f3   : > { %v1914_v10 = vpop.f32.mrf.mxu1  ;;  %v4042_v3 = vpop.f32.mrf.mxu0 }
 0x1f4   : > { %v2056_v8 = vadd.f32 %v1914_v10, %v1724_v26  ;;  %v2051_v45 = vadd.f32 %v4042_v3, %v1719_v57 }
 0x1f5   : > { %v1918_v60 = vpop.f32.mrf.mxu1  ;;  %v2007_v11 = vpop.f32.mrf.mxu0 }
 0x1f6   : > { %v2058_v7 = vadd.f32 %v1918_v60, %v1726_v29  ;;  %v2048_v48 = vadd.f32 %v2007_v11, %v1716_v5 }
 0x1f7   : > { %v1920_v9 = vpop.f32.mrf.mxu1  ;;  %v4045_v63 = vpop.f32.mrf.mxu0 }
 0x1f8   : > { %v2059_v27 = vadd.f32 %v1920_v9, %v1727_v30  ;;  %v2057_v52 = vadd.f32 %v4045_v63, %v1725_v21 }
 0x1f9   : > { %v1924_v14 = vpop.f32.mrf.mxu1  ;;  %v2017_v12 = vpop.f32.mrf.mxu0 }
 0x1fa   : > { %v2061_v2 = vadd.f32 %v1924_v14, %v1729_v33  ;;  %v2054_v56 = vadd.f32 %v2017_v12, %v1722_v28 }
 0x1fb   : > { %v1926_v31 = vpop.f32.mrf.mxu1  ;;  %v4048_v16 = vpop.f32.mrf.mxu0 }
 0x1fc   : > { %v2062_v4 = vadd.f32 %v1926_v31, %v1730_v34  ;;  %v2063_v61 = vadd.f32 %v4048_v16, %v1731_v32 }
 0x1fd   : > { %v1930_v15 = vpop.f32.mrf.mxu1  ;;  %v2027_v36 = vpop.f32.mrf.mxu0 }
 0x1fe   : > { %v2064_v6 = vadd.f32 %v1930_v15, %v1732_v18  ;;  %v2060_v57 = vadd.f32 %v2027_v36, %v1728_v35 }
 0x1ff   : > { %v1932_v20 = vpop.f32.mrf.mxu1  ;;  %v4051_v26 = vpop.f32.mrf.mxu0 }
 0x200   : > { %v2065_v37 = vadd.f32 %v1932_v20, %v1733_v38  ;;  %v2069_v5 = vadd.f32 %v4051_v26, %v1737_v19 }
 0x201   : > { %v1936_v25 = vpop.f32.mrf.mxu1  ;;  %v2037_v29 = vpop.f32.mrf.mxu0 }
 0x202   : > { %v2067_v40 = vadd.f32 %v1936_v25, %v1735_v22  ;;  %v2066_v21 = vadd.f32 %v2037_v29, %v1734_v39 }
 0x203   : > { %v1938_v41 = vpop.f32.mrf.mxu1  ;;  %v2226_v30 = vpop.f32.mrf.mxu0 }
 0x204   : > { %v2068_v43 = vadd.f32 %v1938_v41, %v1736_v17  ;;  %v5512_v28 = vadd.f32 %v2226_v30, %v2046_v13 }
 0x205   : > { %v4062_v44 = vpop.f32.mrf.mxu1  ;;  %v2228_v33 = vpop.f32.mrf.mxu0 }
 0x206   : > { %v5514_v32 = vadd.f32 %v4062_v44, %v2051_v45  ;;  %v5516_v46 = vadd.f32 %v2228_v33, %v2047_v23 }
 0x207   : > { %v2339_v35 = vpop.f32.mrf.mxu1  ;;  %v2232_v47 = vpop.f32.mrf.mxu0 }
 0x208   : > { %v5518_v34 = vadd.f32 %v2339_v35, %v2048_v48  ;;  %v5520_v19 = vadd.f32 %v2232_v47, %v2049_v42 }
 0x209   : > { %v4065_v50 = vpop.f32.mrf.mxu1  ;;  %v2234_v51 = vpop.f32.mrf.mxu0 }
 0x20a   : > { %v5522_v39 = vadd.f32 %v4065_v50, %v2057_v52  ;;  %v5524_v18 = vadd.f32 %v2234_v51, %v2050_v24 }
 0x20b   : > { %v2349_v13 = vpop.f32.mrf.mxu1  ;;  %v2238_v53 = vpop.f32.mrf.mxu0 }
 0x20c   : > { %v5526_v55 = vadd.f32 %v2349_v13, %v2054_v56  ;;  %v5528_v38 = vadd.f32 %v2238_v53, %v2052_v49 }
 0x20d   : > { %v4068_v23 = vpop.f32.mrf.mxu1  ;;  %v2240_v58 = vpop.f32.mrf.mxu0 }
 0x20e   : > { %v5530_v59 = vadd.f32 %v4068_v23, %v2063_v61  ;;  %v5532_v22 = vadd.f32 %v2240_v58, %v2053_v54 }
 0x20f   : > { %v2359_v42 = vpop.f32.mrf.mxu1  ;;  %v2244_v62 = vpop.f32.mrf.mxu0 }
 0x210   : > { %v5534_v0 = vadd.f32 %v2359_v42, %v2060_v57  ;;  %v5536_v17 = vadd.f32 %v2244_v62, %v2055_v1 }
 0x211   : > { %v4071_v24 = vpop.f32.mrf.mxu1  ;;  %v2246_v10 = vpop.f32.mrf.mxu0 }
 0x212   : > { %v5538_v3 = vadd.f32 %v4071_v24, %v2069_v5  ;;  %v5540_v45 = vadd.f32 %v2246_v10, %v2056_v8 }
 0x213   : > { %v2369_v49 = vpop.f32.mrf.mxu1  ;;  %v2250_v60 = vpop.f32.mrf.mxu0 }
 0x214   : > { %5736 = vst [vmem:[#allocation9_spill] sm:$0xff] %v5538_v3  ;;  %v5542_v11 = vadd.f32 %v2369_v49, %v2066_v21  ;;  %v5544_v48 = vadd.f32 %v2250_v60, %v2058_v7 }
 0x215   : > { %v2252_v54 = vpop.f32.mrf.mxu0  ;;  %v2558_v9 = vpop.f32.mrf.mxu1 }
 0x216   : > { %5737 = vst [vmem:[#allocation10_spill] sm:$0xff] %v5542_v11  ;;  %v5546_v63 = vadd.f32 %v2252_v54, %v2059_v27  ;;  %v2710_v3 = vadd.f32 %v2558_v9, %v5512_v28 }
 0x217   : > { %v2256_v52 = vpop.f32.mrf.mxu0  ;;  %v2560_v14 = vpop.f32.mrf.mxu1 }
 0x218   : > { %v5548_v1 = vadd.f32 %v2256_v52, %v2061_v2  ;;  %v2711_v11 = vadd.f32 %v2560_v14, %v5516_v46 }
 0x219   : > { %v2258_v12 = vpop.f32.mrf.mxu0  ;;  %v2564_v56 = vpop.f32.mrf.mxu1 }
 0x21a   : > { %v5550_v31 = vadd.f32 %v2258_v12, %v2062_v4 }
 0x21b   : > { %v2262_v8 = vpop.f32.mrf.mxu0  ;;  %v2566_v16 = vpop.f32.mrf.mxu1 }
 0x21c   : > { %5738 = vst [vmem:[#allocation11_spill] sm:$0xff] %v5550_v31  ;;  %v5552_v61 = vadd.f32 %v2262_v8, %v2064_v6 }
 0x21d   : > { %v2264_v15 = vpop.f32.mrf.mxu0  ;;  %v2570_v36 = vpop.f32.mrf.mxu1 }
 0x21e   : > { %5739 = vst [vmem:[#allocation12_spill] sm:$0xff] %v5552_v61  ;;  %v5554_v7 = vadd.f32 %v2264_v15, %v2065_v37 }
 0x21f   : > { %v2268_v57 = vpop.f32.mrf.mxu0  ;;  %v2572_v20 = vpop.f32.mrf.mxu1 }
 0x220   : > { %5740 = vst [vmem:[#allocation13_spill] sm:$0xff] %v5554_v7  ;;  %v5556_v27 = vadd.f32 %v2268_v57, %v2067_v40  ;;  %v2717_v28 = vadd.f32 %v2572_v20, %v5532_v22 }
 0x221   : > { %v2270_v26 = vpop.f32.mrf.mxu0  ;;  %v5558_v5 = vpop.f32.mrf.mxu1 }
 0x222   : > { %5741 = vst [vmem:[#allocation14_spill] sm:$0xff] %v5556_v27  ;;  %v5560_v2 = vadd.f32 %v2270_v26, %v2068_v43 }
 0x223   : > { %v4082_v25 = vpop.f32.mrf.mxu0  ;;  %v5562_v4 = vpop.f32.mrf.mxu1 }
 0x224   : > { %5742 = vst [vmem:[#allocation15_spill] sm:$0xff] %v5560_v2  ;;  %v2720_v22 = vadd.f32 %v5562_v4, %v5540_v45 }
 0x225   : > { %v5564_v29 = vpop.f32.mrf.mxu1  ;;  %v2671_v6 = vpop.f32.mrf.mxu0 }
 0x227   : > { %v5566_v21 = vpop.f32.mrf.mxu1  ;;  %v5568_v41 = vpop.f32.mrf.mxu0 }
 0x228   : > { %v2721_v4 = vadd.f32 %v5568_v41, %v5522_v39 }
 0x229   : > { %v5572_v30 = vpop.f32.mrf.mxu0 }
 0x22a   : > { %v5570_v37 = vpop.f32.mrf.mxu1 }
 0x22b   : > { %v5576_v44 = vpop.f32.mrf.mxu0 }
 0x22c   : > { %v5574_v40 = vpop.f32.mrf.mxu1 }
 0x22d   : > { %5743 = vst [vmem:[#allocation16_spill] sm:$0xff] %v5574_v40  ;;  %v5580_v33 = vpop.f32.mrf.mxu0 }
 0x22e   : > { %v5578_v43 = vpop.f32.mrf.mxu1 }
 0x22f   : > { %5744 = vst [vmem:[#allocation17_spill] sm:$0xff] %v5578_v43  ;;  %v5584_v47 = vpop.f32.mrf.mxu0  ;;  %v2714_v43 = vadd.f32 %v2566_v16, %v5524_v18  ;;  %v2715_v18 = vadd.f32 %v4082_v25, %v5514_v32 }
 0x230   : > { %v5582_v35 = vpop.f32.mrf.mxu1  ;;  %5746 = vst [vmem:[#allocation19_spill] sm:$0xff] %v5584_v47 }
 0x231   : > { %5745 = vst [vmem:[#allocation18_spill] sm:$0xff] %v5582_v35  ;;  %v5588_v51 = vpop.f32.mrf.mxu0 }
 0x232   : > { %v5586_v50 = vpop.f32.mrf.mxu1  ;;  %5748 = vst [vmem:[#allocation21_spill] sm:$0xff] %v5588_v51 }
 0x233   : > { %5747 = vst [vmem:[#allocation20_spill] sm:$0xff] %v5586_v50 }
 0x234   : > { %v5590_v13 = vpop.f32.mrf.mxu1 }
 0x235   : > { %5749 = vst [vmem:[#allocation22_spill] sm:$0xff] %v5590_v13 }
 0x240   : > { %v2890_v53 = vpop.f32.mrf.mxu0  ;;  %v4102_v23 = vpop.f32.mrf.mxu1 }
 0x241   : > { %v3042_v61 = vadd.f32 %v2890_v53, %v2710_v3  ;;  %v2719_v3 = vadd.f32 %v5558_v5, %v5536_v17  ;;  %v2722_v17 = vadd.f32 %v5564_v29, %v5544_v48  ;;  %v2718_v5 = vadd.f32 %v5572_v30, %v5526_v55 }
 0x242   : > { %v2892_v58 = vpop.f32.mrf.mxu0  ;;  %v3003_v42 = vpop.f32.mrf.mxu1 }
 0x244   : > { %v2896_v62 = vpop.f32.mrf.mxu0  ;;  %v5592_v24 = vpop.f32.mrf.mxu1 }
 0x246   : > { %v2898_v10 = vpop.f32.mrf.mxu0  ;;  %v3013_v60 = vpop.f32.mrf.mxu1 }
 0x248   : > { %v2902_v49 = vpop.f32.mrf.mxu0  ;;  %v5594_v12 = vpop.f32.mrf.mxu1 }
 0x249   : > { %5750 = vst [vmem:[#allocation23_spill] sm:$0xff] %v5594_v12  ;;  %v2713_v12 = vadd.f32 %v2564_v56, %v5520_v19 }
 0x24a   : > { %v2904_v54 = vpop.f32.mrf.mxu0  ;;  %v5596_v57 = vpop.f32.mrf.mxu1 }
 0x24b   : > { %5751 = vst [vmem:[#allocation24_spill] sm:$0xff] %v5596_v57  ;;  %v3046_v57 = vadd.f32 %v2898_v10, %v2714_v43  ;;  %v3049_v16 = vadd.f32 %v2904_v54, %v2717_v28  ;;  %v5758_v54 = vld [vmem:[#allocation11_spill] sm:$0xff] }
 0x24c   : > { %v2908_v52 = vpop.f32.mrf.mxu0 }
 0x24d   : > { %v5602_v2 = vpop.f32.mrf.mxu1 }
 0x24e   : > { %v2910_v8 = vpop.f32.mrf.mxu0  ;;  %5753 = vst [vmem:[#allocation26_spill] sm:$0xff] %v5602_v2  ;;  %v3045_v2 = vadd.f32 %v2896_v62, %v2713_v12  ;;  %v3053_v62 = vadd.f32 %v5592_v24, %v2721_v4 }
 0x24f   : > { %v5608_v35 = vpop.f32.mrf.mxu1 }
 0x250   : > { %v2914_v15 = vpop.f32.mrf.mxu0  ;;  %5756 = vst [vmem:[#allocation29_spill] sm:$0xff] %v5608_v35  ;;  %v3043_v35 = vadd.f32 %v2892_v58, %v2711_v11  ;;  %v2712_v11 = vadd.f32 %v2671_v6, %v5518_v34  ;;  %v3052_v34 = vadd.f32 %v2910_v8, %v2720_v22  ;;  %v2725_v58 = vadd.f32 %v5570_v37, %v5548_v1 }
 0x251   : > { %v3054_v29 = vadd.f32 %v2914_v15, %v2722_v17 }
 0x252   : > { %v5598_v26 = vpop.f32.mrf.mxu0 }
 0x254   : > { %v5600_v13 = vpop.f32.mrf.mxu0 }
 0x255   : > { %5752 = vst [vmem:[#allocation25_spill] sm:$0xff] %v5600_v13 }
 0x256   : > { %v5604_v50 = vpop.f32.mrf.mxu0 }
 0x257   : > { %5754 = vst [vmem:[#allocation27_spill] sm:$0xff] %v5604_v50  ;;  %v2716_v50 = vadd.f32 %v2570_v36, %v5528_v38 }
 0x258   : > { %v5606_v27 = vpop.f32.mrf.mxu0 }
 0x259   : > { %5755 = vst [vmem:[#allocation28_spill] sm:$0xff] %v5606_v27  ;;  %v3048_v19 = vadd.f32 %v2902_v49, %v2716_v50 }
 0x25a   : > { %v5610_v47 = vpop.f32.mrf.mxu0 }
 0x25b   : > { %5757 = vst [vmem:[#allocation30_spill] sm:$0xff] %v5610_v47 }
 0x25c   : > { %v3222_v7 = vpop.f32.mrf.mxu1  ;;  %v5617_v13 = vpop.f32.mrf.mxu0 }
 0x25d   : > { %v3374_v40 = vadd.f32 %v3222_v7, %v3042_v61  ;;  %v3047_v7 = vadd.f32 %v4102_v23, %v2715_v18  ;;  %v5766_v18 = vld [vmem:[#allocation23_spill] sm:$0xff] }
 0x25e   : > { %v3224_v51 = vpop.f32.mrf.mxu1  ;;  %v5623_v38 = vpop.f32.mrf.mxu0 }
 0x25f   : > { %v3375_v56 = vadd.f32 %v3224_v51, %v3043_v35  ;;  %v3050_v51 = vadd.f32 %v3013_v60, %v2718_v5  ;;  %v2727_v60 = vadd.f32 %v5576_v44, %v5530_v59  ;;  %v5764_v59 = vld [vmem:[#allocation10_spill] sm:$0xff]  ;;  %v5765_v44 = vld [vmem:[#allocation21_spill] sm:$0xff] }
 0x260   : > { %v3228_v27 = vpop.f32.mrf.mxu1  ;;  %v5773_v5 = vld [vmem:[#allocation29_spill] sm:$0xff] }
 0x261   : > { %v3377_v47 = vadd.f32 %v3228_v27, %v3045_v2  ;;  %v3044_v2 = vadd.f32 %v3003_v42, %v2712_v11  ;;  %v2724_v42 = vadd.f32 %v5580_v33, %v5534_v0  ;;  %v5760_v0 = vld [vmem:[#allocation24_spill] sm:$0xff]  ;;  %v5761_v33 = vld [vmem:[#allocation25_spill] sm:$0xff] }
 0x262   : > { %v3230_v9 = vpop.f32.mrf.mxu1  ;;  %v3057_v24 = vadd.f32 %v5761_v33, %v2725_v58 }
 0x263   : > { %v3398_v31 = vmax.f32 %v3374_v40, %v3377_v47  ;;  %v3378_v46 = vadd.f32 %v3230_v9, %v3046_v57  ;;  %v3051_v40 = vadd.f32 %v2908_v52, %v2719_v3  ;;  %v5759_v52 = vld [vmem:[#allocation16_spill] sm:$0xff]  ;;  %v3056_v37 = vadd.f32 %v5760_v0, %v2724_v42 }
 0x264   : > { %v3234_v14 = vpop.f32.mrf.mxu1  ;;  %v2726_v1 = vadd.f32 %v5759_v52, %v5758_v54  ;;  %v5762_v9 = vld [vmem:[#allocation12_spill] sm:$0xff]  ;;  %v3059_v3 = vadd.f32 %v5766_v18, %v2727_v60 }
 0x265   : > { %v3399_v61 = vmax.f32 %v3375_v56, %v3378_v46  ;;  %v3380_v36 = vadd.f32 %v3234_v14, %v3048_v19  ;;  %v5763_v19 = vld [vmem:[#allocation17_spill] sm:$0xff]  ;;  %v2730_v46 = vadd.f32 %v5765_v44, %v5764_v59  ;;  %v5767_v14 = vld [vmem:[#allocation27_spill] sm:$0xff] }
 0x266   : > { %v3236_v20 = vpop.f32.mrf.mxu1  ;;  %v4122_v27 = vpop.f32.mrf.mxu0  ;;  %v2728_v56 = vadd.f32 %v5763_v19, %v5762_v9  ;;  %v3058_v11 = vadd.f32 %v5767_v14, %v2726_v1 }
 0x267   : > { %v3401_v32 = vmax.f32 %v3398_v31, %v3380_v36  ;;  %v3381_v25 = vadd.f32 %v3236_v20, %v3049_v16  ;;  %v3379_v47 = vadd.f32 %v4122_v27, %v3047_v7  ;;  %v2723_v31 = vadd.f32 %v5566_v21, %v5546_v63  ;;  %v5769_v27 = vld [vmem:[#allocation9_spill] sm:$0xff] }
 0x268   : > { %v3240_v6 = vpop.f32.mrf.mxu1  ;;  %v3335_v43 = vpop.f32.mrf.mxu0 }
 0x269   : > { %v3402_v35 = vmax.f32 %v3399_v61, %v3381_v25  ;;  %v3383_v50 = vadd.f32 %v3240_v6, %v3051_v40  ;;  %v3376_v45 = vadd.f32 %v3335_v43, %v3044_v2  ;;  %v3055_v63 = vadd.f32 %v5598_v26, %v2723_v31  ;;  %v5770_v2 = vld [vmem:[#allocation19_spill] sm:$0xff]  ;;  %v5772_v25 = vld [vmem:[#allocation18_spill] sm:$0xff]  ;;  %v5774_v6 = vld [vmem:[#allocation28_spill] sm:$0xff] }
 0x26a   : > { %v3242_v53 = vpop.f32.mrf.mxu1  ;;  %v4125_v48 = vpop.f32.mrf.mxu0  ;;  %v2733_v40 = vadd.f32 %v5770_v2, %v5769_v27  ;;  %v3060_v43 = vadd.f32 %v5774_v6, %v2728_v56 }
 0x26b   : > { %v3404_v55 = vmax.f32 %v3401_v32, %v3383_v50  ;;  %v3400_v30 = vmax.f32 %v3376_v45, %v3379_v47  ;;  %v3384_v23 = vadd.f32 %v3242_v53, %v3052_v34  ;;  %v3385_v15 = vadd.f32 %v4125_v48, %v3053_v62  ;;  %v5771_v32 = vld [vmem:[#allocation13_spill] sm:$0xff]  ;;  %v5776_v53 = vld [vmem:[#allocation20_spill] sm:$0xff] }
 0x26c   : > { %v3246_v39 = vpop.f32.mrf.mxu1  ;;  %v3345_v41 = vpop.f32.mrf.mxu0  ;;  %v2729_v17 = vadd.f32 %v5772_v25, %v5771_v32  ;;  %v3062_v34 = vadd.f32 %v5773_v5, %v2730_v46 }
 0x26d   : > { %v3405_v21 = vmax.f32 %v3402_v35, %v3384_v23  ;;  %v3386_v10 = vadd.f32 %v3246_v39, %v3054_v29  ;;  %v3382_v49 = vadd.f32 %v3345_v41, %v3050_v51  ;;  %v5775_v51 = vld [vmem:[#allocation14_spill] sm:$0xff] }
 0x26e   : > { %v3248_v12 = vpop.f32.mrf.mxu1  ;;  %v4128_v8 = vpop.f32.mrf.mxu0  ;;  %v2731_v48 = vadd.f32 %v5776_v53, %v5775_v51  ;;  %v5777_v29 = vld [vmem:[#allocation26_spill] sm:$0xff] }
 0x26f   : > { %v3407_v57 = vmax.f32 %v3404_v55, %v3386_v10  ;;  %v3403_v26 = vmax.f32 %v3400_v30, %v3382_v49  ;;  %v3387_v28 = vadd.f32 %v3248_v12, %v3055_v63  ;;  %v3391_v50 = vadd.f32 %v4128_v8, %v3059_v3  ;;  %v5778_v30 = vld [vmem:[#allocation30_spill] sm:$0xff] }
 0x270   : > { %v3252_v16 = vpop.f32.mrf.mxu1  ;;  %v3355_v61 = vpop.f32.mrf.mxu0  ;;  %v3065_v55 = vadd.f32 %v5777_v29, %v2733_v40  ;;  %v3061_v23 = vadd.f32 %v5778_v30, %v2729_v17  ;;  %v5780_v10 = vld [vmem:[#allocation22_spill] sm:$0xff]  ;;  %v3063_v60 = vadd.f32 %v5617_v13, %v2731_v48 }
 0x271   : > { %v3408_v36 = vmax.f32 %v3405_v21, %v3387_v28  ;;  %v3389_v22 = vadd.f32 %v3252_v16, %v3057_v24  ;;  %v3388_v7 = vadd.f32 %v3355_v61, %v3056_v37  ;;  %v3406_v20 = vmax.f32 %v3403_v26, %v3385_v15  ;;  %v5779_v21 = vld [vmem:[#allocation15_spill] sm:$0xff]  ;;  %v3423_v24 = vpop.permute.xlu0 %3422  ;;  %v3432_v28 = vpop.permute.xlu1 %3431 }
 0x272   : > { %v3254_v35 = vpop.f32.mrf.mxu1  ;;  %v4131_v47 = vpop.f32.mrf.mxu0  ;;  %v2732_v49 = vadd.f32 %v5780_v10, %v5779_v21 }
 0x273   : > { %v3410_v45 = vmax.f32 %v3407_v57, %v3389_v22  ;;  %v3409_v4 = vmax.f32 %v3406_v20, %v3388_v7  ;;  %v3390_v31 = vadd.f32 %v3254_v35, %v3058_v11  ;;  %v3397_v52 = vadd.f32 %v4131_v47, %v3065_v55 }
 0x274   : > { %v3258_v58 = vpop.f32.mrf.mxu1  ;;  %v3365_v42 = vpop.f32.mrf.mxu0  ;;  %v3064_v12 = vadd.f32 %v5623_v38, %v2732_v49 }
 0x275   : > { %v3411_v62 = vmax.f32 %v3408_v36, %v3390_v31  ;;  %v3392_v39 = vadd.f32 %v3258_v58, %v3060_v43  ;;  %v3394_v41 = vadd.f32 %v3365_v42, %v3062_v34  ;;  %v3412_v63 = vmax.f32 %v3409_v4, %v3391_v50 }
 0x276   : > { %v3260_v54 = vpop.f32.mrf.mxu1 }
 0x277   : > { %v3413_v1 = vmax.f32 %v3410_v45, %v3392_v39  ;;  %v3415_v0 = vmax.f32 %v3412_v63, %v3394_v41  ;;  %v3393_v37 = vadd.f32 %v3260_v54, %v3061_v23 }
 0x278   : > { %v3264_v33 = vpop.f32.mrf.mxu1 }
 0x279   : > { %v3414_v8 = vmax.f32 %v3411_v62, %v3393_v37  ;;  %v3395_v15 = vadd.f32 %v3264_v33, %v3063_v60  ;;  %v3418_v57 = vmax.f32 %v3415_v0, %v3397_v52 }
 0x27a   : > { %v3266_v26 = vpop.f32.mrf.mxu1 }
 0x27b   : > { %v3416_v9 = vmax.f32 %v3413_v1, %v3395_v15  ;;  %v3427_v19 = vmul.f32 %v3423_v24, %v3418_v57  ;;  %v3396_v56 = vadd.f32 %v3266_v26, %v3064_v12 }
 0x27d   : > { %v3425_v13 = vmul.f32 %v3423_v24, %v3416_v9  ;;  %v3417_v59 = vmax.f32 %v3414_v8, %v3396_v56  ;;  %v3436_v44 = vadd.f32 %v3432_v28, %v3427_v19 }
 0x27f   : > { %v3426_v46 = vmul.f32 %v3423_v24, %v3417_v59  ;;  %v3434_v18 = vadd.f32 %v3432_v28, %v3425_v13  ;;  %vm3439_vm8 = vcmp.ge.f32.partialorder %v3436_v44, 0.0  ;;  %v3442_v38 = vmul.f32 0.01, %v3436_v44 }
 0x281   : > { %v3435_v3 = vadd.f32 %v3432_v28, %v3426_v46  ;;  %vm3437_vm9 = vcmp.ge.f32.partialorder %v3434_v18, 0.0  ;;  %v3440_v14 = vmul.f32 0.01, %v3434_v18  ;;  %v3445_v11 = vsel %vm3439_vm8, %v3436_v44, %v3442_v38 }
 0x282   : > { %3448 = vst [vmem:[%s769_s10 + $0x10] sm:$0xff] %v3445_v11 }
 0x283   : > { %vm3438_vm10 = vcmp.ge.f32.partialorder %v3435_v3, 0.0  ;;  %v3441_v16 = vmul.f32 0.01, %v3435_v3  ;;  %v3443_v61 = vsel %vm3437_vm9, %v3434_v18, %v3440_v14 }
 0x284   : > { %3446 = vst [vmem:[%s769_s10] sm:$0xff] %v3443_v61 }
 0x285   : > { %v3444_v36 = vsel %vm3438_vm10, %v3435_v3, %v3441_v16 }
 0x286   : > { %3447 = vst [vmem:[%s769_s10 + $0x8] sm:$0xff] %v3444_v36 }
 0x287 PF: > { %s15_s26 = sadd.s32 1, %s4487_s26   ;;  %s5781_s20 = sld [smem:[#allocation5_spill]] }
 0x288   : > { %p12_p3 = scmp.ge.s32.totalorder %s15_s26, 6   ;;  %s5782_s21 = sld [smem:[#allocation8_spill]] }
 0x289   : > { %s5783_s28 = sld [smem:[#allocation6_spill]]  ;;  %s5785_s18 = smov %s4459_s19 }
 0x28a   : > { %s5784_s0 = sld [smem:[#allocation7_spill]]  ;;  %s5786_s19 = smov %s4624_s27 }
 0x28b   : > { %s5787_s22 = smov %s4479_s24  ;;  %s5788_s23 = smov %s4483_s25 }
 0x28c   :  { %14 = sbr.rel (!%p12_p3) target bundleno = 7 (0x7), region = 256 }
 0x28f   : > { %s5789_s24 = smov %s5783_s28 }
 0x290   : > { %s5790_s25 = smov %s5784_s0 }

</bundles_post_ra>
